<compile_context>
chip_gen: v7x
topology: tpu7x:2x2x1
jax: 0.10.0
libtpu: 0.0.40
codegen_flags: <defaults>
</compile_context>

<pallas_src>
import functools

import jax
import jax.numpy as jnp
from jax import lax
from jax.experimental import pallas as pl
from jax.experimental.pallas import tpu as pltpu

KSIZE = 7
PAD = 3


def _spatial_attention_kernel(w_ref, row_ref, col_ref, x_ref, o_ref,
                              sum_sc, max_sc, *, H, W):
    # w_ref   : SMEM f32[2*7*7]        conv weights (c, ky, kx); avg taps pre-scaled by 1/C
    # row_ref : VMEM i32[1, HWp]       per-pixel row index (grid-invariant)
    # col_ref : VMEM i32[1, HWp]       per-pixel col index (grid-invariant)
    # x_ref   : VMEM f32[nb, Ct, HWp]  one channel tile of the input block
    # o_ref   : VMEM     [nb, 1, HWp]  sigmoid(conv) output
    # sum_sc  : VMEM f32[nb, HWp]      running channel sum  (persists across the C axis)
    # max_sc  : VMEM f32[nb, HWp]      running channel max
    k = pl.program_id(1)
    last_k = pl.num_programs(1) - 1
    HWp = x_ref.shape[-1]

    x = x_ref[...].astype(jnp.float32)
    part_sum = jnp.sum(x, axis=1)              # (nb, HWp)
    part_max = jnp.max(x, axis=1)              # (nb, HWp)

    @pl.when(k == 0)
    def _():
        sum_sc[...] = part_sum
        max_sc[...] = part_max

    @pl.when(k != 0)
    def _():
        sum_sc[...] = sum_sc[...] + part_sum
        max_sc[...] = jnp.maximum(max_sc[...], part_max)

    @pl.when(k == last_k)
    def _():
        s = sum_sc[...]                        # feeds "avg" channel (1/C folded into w)
        m = max_sc[...]
        row = row_ref[...]                     # (1, HWp) int32
        col = col_ref[...]

        # 14 factored boundary masks for zero padding of 3 (never 49 products).
        col_ok = [jnp.logical_and(col + (kx - PAD) >= 0, col + (kx - PAD) < W)
                  for kx in range(KSIZE)]
        row_ok = [jnp.logical_and(row + (ky - PAD) >= 0, row + (ky - PAD) < H)
                  for ky in range(KSIZE)]

        # Column pass: 6 lane rolls per channel, shared by all ky; 14 selects.
        # Accumulate the 7 per-ky horizontal partial sums (independent chains),
        # fusing the two conv channels per tap.
        r = [None] * KSIZE
        for kx in range(KSIZE):
            dx = kx - PAD
            if dx == 0:
                ss, mm = s, m
            else:
                ss = pltpu.roll(s, shift=(-dx) % HWp, axis=1)
                mm = pltpu.roll(m, shift=(-dx) % HWp, axis=1)
            ss = jnp.where(col_ok[kx], ss, 0.0)
            mm = jnp.where(col_ok[kx], mm, 0.0)
            for ky in range(KSIZE):
                ws = w_ref[ky * KSIZE + kx]                    # avg channel (pre /C)
                wm = w_ref[KSIZE * KSIZE + ky * KSIZE + kx]    # max channel
                term = ws * ss + wm * mm
                r[ky] = term if r[ky] is None else r[ky] + term

        # Row pass: 6 W-multiple rolls + 7 row-mask selects.
        acc = None
        for ky in range(KSIZE):
            dy = ky - PAD
            rk = r[ky]
            if dy != 0:
                rk = pltpu.roll(rk, shift=(-(dy * W)) % HWp, axis=1)
            rk = jnp.where(row_ok[ky], rk, 0.0)
            acc = rk if acc is None else acc + rk

        o_ref[...] = jax.nn.sigmoid(acc)[:, None, :].astype(o_ref.dtype)


def _round_up(x, m):
    return -(-x // m) * m


def _block_vmem_bytes(nb, ct, hwp):
    """Honest per-step VMEM model: double-buffered in/out blocks + temporaries."""
    ct_pad = _round_up(ct, 8)                 # channel axis sits on sublanes
    nb_pad = _round_up(nb, 8)                 # 2-D temporaries pad sublanes too
    in_bytes = 2 * nb * ct_pad * hwp * 4      # x block, double-buffered
    out_bytes = 2 * nb * 8 * hwp * 4          # (nb,1,HWp) block, sublane-padded
    tmp_bytes = 16 * nb_pad * hwp * 4         # s,m,cs,cm,7*r,acc,2 scratch,+slack
    misc_bytes = 2 * 2 * hwp * 4              # row/col index vectors
    return in_bytes + out_bytes + tmp_bytes + misc_bytes


def _pick_tiles(N, C, hwp, budget):
    """Largest (nb, Ct) fitting the budget; keep >=2 batch grid steps if N>=2."""
    nb_cap = max(1, N // 2)                   # feed both v7x TCs / pipeline depth
    nb_cands = [d for d in range(nb_cap, 0, -1) if N % d == 0]
    ct_cands = [C] + [d for d in range(8 * (C // 8), 0, -8)
                      if d != C and C % d == 0]
    for ct in ct_cands:                       # prefer whole-C (no reduction steps)
        for nb in nb_cands:                   # then the fattest batch block
            if _block_vmem_bytes(nb, ct, hwp) <= budget:
                return nb, ct
    return 1, ct_cands[-1]


def spatial_attention(x, w):
    """x: (N, C, H, W) float32; w: (1, 2, 7, 7) Conv2d(2,1,7,bias=False) weight."""
    N, C, H, W = x.shape
    HW = H * W
    HWp = _round_up(HW, 128)                  # lane-dense, roll-friendly padding

    # Fold 1/C of the channel mean into the avg-channel taps; flatten for SMEM.
    w = w.astype(jnp.float32)
    w_flat = (w[0] * jnp.array([1.0 / C, 1.0], jnp.float32)[:, None, None]).reshape(-1)

    x_flat = x.reshape(N, C, HW).astype(jnp.float32)
    if HWp != HW:
        x_flat = jnp.pad(x_flat, ((0, 0), (0, 0), (0, HWp - HW)))

    # Grid-invariant pixel coordinates (no vector int div/mod inside the kernel).
    pos = jnp.arange(HWp, dtype=jnp.int32)
    row_idx = (pos // W).reshape(1, HWp)
    col_idx = (pos % W).reshape(1, HWp)

    # Generation-aware VMEM plan: v7x has 64 MiB/TC, v5e/v6e have 128 MiB.
    try:
        vmem_cap = int(pltpu.get_tpu_info().vmem_capacity_bytes)
    except Exception:
        vmem_cap = 64 << 20                   # conservative fallback
    vmem_limit = min(vmem_cap * 3 // 4, 100 << 20)   # ~48 MiB v7x, ~96 MiB v5e/v6e
    budget = int(vmem_limit * 0.8)

    nb, ct = _pick_tiles(N, C, HWp, budget)
    grid = (N // nb, C // ct)                 # batch parallel, C-reduction last

    kernel = functools.partial(_spatial_attention_kernel, H=H, W=W)

    out = pl.pallas_call(
        kernel,
        out_shape=jax.ShapeDtypeStruct((N, 1, HWp), x.dtype),
        grid=grid,
        in_specs=[
            pl.BlockSpec(memory_space=pltpu.MemorySpace.SMEM),       # weights
            pl.BlockSpec((1, HWp), lambda n, k: (0, 0)),             # row index
            pl.BlockSpec((1, HWp), lambda n, k: (0, 0)),             # col index
            pl.BlockSpec((nb, ct, HWp), lambda n, k: (n, k, 0)),     # x tile
        ],
        out_specs=pl.BlockSpec((nb, 1, HWp), lambda n, k: (n, 0, 0)),
        scratch_shapes=[
            pltpu.VMEM((nb, HWp), jnp.float32),   # running channel sum
            pltpu.VMEM((nb, HWp), jnp.float32),   # running channel max
        ],
        compiler_params=pltpu.CompilerParams(
            dimension_semantics=("parallel", "arbitrary"),
            vmem_limit_bytes=int(vmem_limit),
        ),
    )(w_flat, row_idx, col_idx, x_flat)

    out = out[..., :HW]                       # drop lane padding
    return out.reshape(N, 1, H, W)


def reference(x, w):
    """Pure-JAX reference mirroring the PyTorch forward."""
    avg = jnp.mean(x, axis=1, keepdims=True)
    mx = jnp.max(x, axis=1, keepdims=True)
    xc = jnp.concatenate([avg, mx], axis=1)
    y = lax.conv_general_dilated(
        xc, w, window_strides=(1, 1),
        padding=((PAD, PAD), (PAD, PAD)),
        dimension_numbers=("NCHW", "OIHW", "NCHW"))
    return jax.nn.sigmoid(y)


if __name__ == "__main__":
    key = jax.random.PRNGKey(0)
    kx_, kw_ = jax.random.split(key)

    N, C, H, W = 2, 4, 16, 16
    x = jax.random.normal(kx_, (N, C, H, W), dtype=jnp.float32)

    # Deterministic Conv2d(2, 1, 7, bias=False) weight (kaiming-uniform-like bound).
    fan_in = 2 * KSIZE * KSIZE
    bound = 1.0 / (fan_in ** 0.5)
    w = jax.random.uniform(kw_, (1, 2, KSIZE, KSIZE),
                           minval=-bound, maxval=bound, dtype=jnp.float32)

    out = spatial_attention(x, w)
    out = jax.block_until_ready(out)

    ref = reference(x, w)
    assert out.shape == (N, 1, H, W)
    assert jnp.allclose(out, ref, atol=1e-5, rtol=1e-5), "mismatch vs reference"
    print("KERNEL_OK")
</pallas_src>

<mosaic_0001>
module attributes {stable_mosaic.version = 11 : i64} {
  func.func @_spatial_attention_kernel(%arg0: i32, %arg1: i32, %arg2: memref<98xf32, #tpu.memory_space<smem>>, %arg3: memref<1x256xi32, #tpu.memory_space<vmem>>, %arg4: memref<1x256xi32, #tpu.memory_space<vmem>>, %arg5: memref<1x4x256xf32, #tpu.memory_space<vmem>>, %arg6: memref<1x1x256xf32, #tpu.memory_space<vmem>>, %arg7: memref<1x256xf32, #tpu.memory_space<vmem>>, %arg8: memref<1x256xf32, #tpu.memory_space<vmem>>) attributes {dimension_semantics = [#tpu.dimension_semantics<parallel>, #tpu.dimension_semantics<arbitrary>], iteration_bounds = array<i64: 2, 1>, scalar_prefetch = 0 : i64, scratch_operands = 2 : i64, tpu.core_type = #tpu.core_type<tc>, window_params = [{transform_indices = @transform_0, window_bounds = array<i64: 98>}, {pipeline_mode = #tpu.pipeline_mode<synchronous>, transform_indices = @transform_1, window_bounds = array<i64: 1, 256>}, {pipeline_mode = #tpu.pipeline_mode<synchronous>, transform_indices = @transform_2, window_bounds = array<i64: 1, 256>}, {transform_indices = @transform_3, window_bounds = array<i64: 1, 4, 256>}, {transform_indices = @transform_4, window_bounds = array<i64: 1, 1, 256>}]} {
    %c0 = arith.constant 0 : index
    %c0_0 = arith.constant 0 : index
    %c0_1 = arith.constant 0 : index
    %0 = vector.load %arg5[%c0, %c0_0, %c0_1] : memref<1x4x256xf32, #tpu.memory_space<vmem>>, vector<1x4x256xf32>
    %cst = arith.constant dense<0.000000e+00> : vector<1x256xf32>
    %1 = vector.multi_reduction <add>, %0, %cst [1] : vector<1x4x256xf32> to vector<1x256xf32>
    %cst_2 = arith.constant dense<0xFF800000> : vector<1x256xf32>
    %2 = vector.multi_reduction <maximumf>, %0, %cst_2 [1] : vector<1x4x256xf32> to vector<1x256xf32>
    %c0_i32 = arith.constant 0 : i32
    %3 = arith.cmpi eq, %arg1, %c0_i32 : i32
    %4 = arith.extui %3 : i1 to i32
    %c0_i32_3 = arith.constant 0 : i32
    %5 = arith.cmpi ne, %4, %c0_i32_3 : i32
    scf.if %5 {
      %c0_8 = arith.constant 0 : index
      %c0_9 = arith.constant 0 : index
      %12 = vector.load %arg7[%c0_8, %c0_9] : memref<1x256xf32, #tpu.memory_space<vmem>>, vector<1x256xf32>
      tpu.vector_store %arg7[%c0_8, %c0_9], %1 {strides = array<i32>} : memref<1x256xf32, #tpu.memory_space<vmem>>, vector<1x256xf32>,
      %c0_10 = arith.constant 0 : index
      %c0_11 = arith.constant 0 : index
      %13 = vector.load %arg8[%c0_10, %c0_11] : memref<1x256xf32, #tpu.memory_space<vmem>>, vector<1x256xf32>
      tpu.vector_store %arg8[%c0_10, %c0_11], %2 {strides = array<i32>} : memref<1x256xf32, #tpu.memory_space<vmem>>, vector<1x256xf32>,
    } else {
    }
    %c0_i32_4 = arith.constant 0 : i32
    %6 = arith.cmpi ne, %arg1, %c0_i32_4 : i32
    %7 = arith.extui %6 : i1 to i32
    %c0_i32_5 = arith.constant 0 : i32
    %8 = arith.cmpi ne, %7, %c0_i32_5 : i32
    scf.if %8 {
      %c0_8 = arith.constant 0 : index
      %c0_9 = arith.constant 0 : index
      %12 = vector.load %arg7[%c0_8, %c0_9] : memref<1x256xf32, #tpu.memory_space<vmem>>, vector<1x256xf32>
      %13 = arith.addf %12, %1 : vector<1x256xf32>
      %c0_10 = arith.constant 0 : index
      %c0_11 = arith.constant 0 : index
      %14 = vector.load %arg7[%c0_10, %c0_11] : memref<1x256xf32, #tpu.memory_space<vmem>>, vector<1x256xf32>
      tpu.vector_store %arg7[%c0_10, %c0_11], %13 {strides = array<i32>} : memref<1x256xf32, #tpu.memory_space<vmem>>, vector<1x256xf32>,
      %c0_12 = arith.constant 0 : index
      %c0_13 = arith.constant 0 : index
      %15 = vector.load %arg8[%c0_12, %c0_13] : memref<1x256xf32, #tpu.memory_space<vmem>>, vector<1x256xf32>
      %16 = arith.maximumf %15, %2 : vector<1x256xf32>
      %c0_14 = arith.constant 0 : index
      %c0_15 = arith.constant 0 : index
      %17 = vector.load %arg8[%c0_14, %c0_15] : memref<1x256xf32, #tpu.memory_space<vmem>>, vector<1x256xf32>
      tpu.vector_store %arg8[%c0_14, %c0_15], %16 {strides = array<i32>} : memref<1x256xf32, #tpu.memory_space<vmem>>, vector<1x256xf32>,
    } else {
    }
    %c0_i32_6 = arith.constant 0 : i32
    %9 = arith.cmpi eq, %arg1, %c0_i32_6 : i32
    %10 = arith.extui %9 : i1 to i32
    %c0_i32_7 = arith.constant 0 : i32
    %11 = arith.cmpi ne, %10, %c0_i32_7 : i32
    scf.if %11 {
      %c0_8 = arith.constant 0 : index
      %c0_9 = arith.constant 0 : index
      %12 = vector.load %arg7[%c0_8, %c0_9] : memref<1x256xf32, #tpu.memory_space<vmem>>, vector<1x256xf32>
      %c0_10 = arith.constant 0 : index
      %c0_11 = arith.constant 0 : index
      %13 = vector.load %arg8[%c0_10, %c0_11] : memref<1x256xf32, #tpu.memory_space<vmem>>, vector<1x256xf32>
      %c0_12 = arith.constant 0 : index
      %c0_13 = arith.constant 0 : index
      %14 = vector.load %arg3[%c0_12, %c0_13] : memref<1x256xi32, #tpu.memory_space<vmem>>, vector<1x256xi32>
      %c0_14 = arith.constant 0 : index
      %c0_15 = arith.constant 0 : index
      %15 = vector.load %arg4[%c0_14, %c0_15] : memref<1x256xi32, #tpu.memory_space<vmem>>, vector<1x256xi32>
      %c-3_i32 = arith.constant -3 : i32
      %16 = vector.broadcast %c-3_i32 : i32 to vector<1x256xi32>
      %17 = arith.addi %15, %16 : vector<1x256xi32>
      %c0_i32_16 = arith.constant 0 : i32
      %18 = vector.broadcast %c0_i32_16 : i32 to vector<1x256xi32>
      %19 = arith.cmpi sge, %17, %18 : vector<1x256xi32>
      %c-3_i32_17 = arith.constant -3 : i32
      %20 = vector.broadcast %c-3_i32_17 : i32 to vector<1x256xi32>
      %21 = arith.addi %15, %20 : vector<1x256xi32>
      %c16_i32 = arith.constant 16 : i32
      %22 = vector.broadcast %c16_i32 : i32 to vector<1x256xi32>
      %23 = arith.cmpi slt, %21, %22 : vector<1x256xi32>
      %24 = arith.andi %19, %23 : vector<1x256xi1>
      %c-2_i32 = arith.constant -2 : i32
      %25 = vector.broadcast %c-2_i32 : i32 to vector<1x256xi32>
      %26 = arith.addi %15, %25 : vector<1x256xi32>
      %c0_i32_18 = arith.constant 0 : i32
      %27 = vector.broadcast %c0_i32_18 : i32 to vector<1x256xi32>
      %28 = arith.cmpi sge, %26, %27 : vector<1x256xi32>
      %c-2_i32_19 = arith.constant -2 : i32
      %29 = vector.broadcast %c-2_i32_19 : i32 to vector<1x256xi32>
      %30 = arith.addi %15, %29 : vector<1x256xi32>
      %c16_i32_20 = arith.constant 16 : i32
      %31 = vector.broadcast %c16_i32_20 : i32 to vector<1x256xi32>
      %32 = arith.cmpi slt, %30, %31 : vector<1x256xi32>
      %33 = arith.andi %28, %32 : vector<1x256xi1>
      %c-1_i32 = arith.constant -1 : i32
      %34 = vector.broadcast %c-1_i32 : i32 to vector<1x256xi32>
      %35 = arith.addi %15, %34 : vector<1x256xi32>
      %c0_i32_21 = arith.constant 0 : i32
      %36 = vector.broadcast %c0_i32_21 : i32 to vector<1x256xi32>
      %37 = arith.cmpi sge, %35, %36 : vector<1x256xi32>
      %c-1_i32_22 = arith.constant -1 : i32
      %38 = vector.broadcast %c-1_i32_22 : i32 to vector<1x256xi32>
      %39 = arith.addi %15, %38 : vector<1x256xi32>
      %c16_i32_23 = arith.constant 16 : i32
      %40 = vector.broadcast %c16_i32_23 : i32 to vector<1x256xi32>
      %41 = arith.cmpi slt, %39, %40 : vector<1x256xi32>
      %42 = arith.andi %37, %41 : vector<1x256xi1>
      %c0_i32_24 = arith.constant 0 : i32
      %43 = vector.broadcast %c0_i32_24 : i32 to vector<1x256xi32>
      %44 = arith.addi %15, %43 : vector<1x256xi32>
      %c0_i32_25 = arith.constant 0 : i32
      %45 = vector.broadcast %c0_i32_25 : i32 to vector<1x256xi32>
      %46 = arith.cmpi sge, %44, %45 : vector<1x256xi32>
      %c0_i32_26 = arith.constant 0 : i32
      %47 = vector.broadcast %c0_i32_26 : i32 to vector<1x256xi32>
      %48 = arith.addi %15, %47 : vector<1x256xi32>
      %c16_i32_27 = arith.constant 16 : i32
      %49 = vector.broadcast %c16_i32_27 : i32 to vector<1x256xi32>
      %50 = arith.cmpi slt, %48, %49 : vector<1x256xi32>
      %51 = arith.andi %46, %50 : vector<1x256xi1>
      %c1_i32 = arith.constant 1 : i32
      %52 = vector.broadcast %c1_i32 : i32 to vector<1x256xi32>
      %53 = arith.addi %15, %52 : vector<1x256xi32>
      %c0_i32_28 = arith.constant 0 : i32
      %54 = vector.broadcast %c0_i32_28 : i32 to vector<1x256xi32>
      %55 = arith.cmpi sge, %53, %54 : vector<1x256xi32>
      %c1_i32_29 = arith.constant 1 : i32
      %56 = vector.broadcast %c1_i32_29 : i32 to vector<1x256xi32>
      %57 = arith.addi %15, %56 : vector<1x256xi32>
      %c16_i32_30 = arith.constant 16 : i32
      %58 = vector.broadcast %c16_i32_30 : i32 to vector<1x256xi32>
      %59 = arith.cmpi slt, %57, %58 : vector<1x256xi32>
      %60 = arith.andi %55, %59 : vector<1x256xi1>
      %c2_i32 = arith.constant 2 : i32
      %61 = vector.broadcast %c2_i32 : i32 to vector<1x256xi32>
      %62 = arith.addi %15, %61 : vector<1x256xi32>
      %c0_i32_31 = arith.constant 0 : i32
      %63 = vector.broadcast %c0_i32_31 : i32 to vector<1x256xi32>
      %64 = arith.cmpi sge, %62, %63 : vector<1x256xi32>
      %c2_i32_32 = arith.constant 2 : i32
      %65 = vector.broadcast %c2_i32_32 : i32 to vector<1x256xi32>
      %66 = arith.addi %15, %65 : vector<1x256xi32>
      %c16_i32_33 = arith.constant 16 : i32
      %67 = vector.broadcast %c16_i32_33 : i32 to vector<1x256xi32>
      %68 = arith.cmpi slt, %66, %67 : vector<1x256xi32>
      %69 = arith.andi %64, %68 : vector<1x256xi1>
      %c3_i32 = arith.constant 3 : i32
      %70 = vector.broadcast %c3_i32 : i32 to vector<1x256xi32>
      %71 = arith.addi %15, %70 : vector<1x256xi32>
      %c0_i32_34 = arith.constant 0 : i32
      %72 = vector.broadcast %c0_i32_34 : i32 to vector<1x256xi32>
      %73 = arith.cmpi sge, %71, %72 : vector<1x256xi32>
      %c3_i32_35 = arith.constant 3 : i32
      %74 = vector.broadcast %c3_i32_35 : i32 to vector<1x256xi32>
      %75 = arith.addi %15, %74 : vector<1x256xi32>
      %c16_i32_36 = arith.constant 16 : i32
      %76 = vector.broadcast %c16_i32_36 : i32 to vector<1x256xi32>
      %77 = arith.cmpi slt, %75, %76 : vector<1x256xi32>
      %78 = arith.andi %73, %77 : vector<1x256xi1>
      %c-3_i32_37 = arith.constant -3 : i32
      %79 = vector.broadcast %c-3_i32_37 : i32 to vector<1x256xi32>
      %80 = arith.addi %14, %79 : vector<1x256xi32>
      %c0_i32_38 = arith.constant 0 : i32
      %81 = vector.broadcast %c0_i32_38 : i32 to vector<1x256xi32>
      %82 = arith.cmpi sge, %80, %81 : vector<1x256xi32>
      %c-3_i32_39 = arith.constant -3 : i32
      %83 = vector.broadcast %c-3_i32_39 : i32 to vector<1x256xi32>
      %84 = arith.addi %14, %83 : vector<1x256xi32>
      %c16_i32_40 = arith.constant 16 : i32
      %85 = vector.broadcast %c16_i32_40 : i32 to vector<1x256xi32>
      %86 = arith.cmpi slt, %84, %85 : vector<1x256xi32>
      %87 = arith.andi %82, %86 : vector<1x256xi1>
      %c-2_i32_41 = arith.constant -2 : i32
      %88 = vector.broadcast %c-2_i32_41 : i32 to vector<1x256xi32>
      %89 = arith.addi %14, %88 : vector<1x256xi32>
      %c0_i32_42 = arith.constant 0 : i32
      %90 = vector.broadcast %c0_i32_42 : i32 to vector<1x256xi32>
      %91 = arith.cmpi sge, %89, %90 : vector<1x256xi32>
      %c-2_i32_43 = arith.constant -2 : i32
      %92 = vector.broadcast %c-2_i32_43 : i32 to vector<1x256xi32>
      %93 = arith.addi %14, %92 : vector<1x256xi32>
      %c16_i32_44 = arith.constant 16 : i32
      %94 = vector.broadcast %c16_i32_44 : i32 to vector<1x256xi32>
      %95 = arith.cmpi slt, %93, %94 : vector<1x256xi32>
      %96 = arith.andi %91, %95 : vector<1x256xi1>
      %c-1_i32_45 = arith.constant -1 : i32
      %97 = vector.broadcast %c-1_i32_45 : i32 to vector<1x256xi32>
      %98 = arith.addi %14, %97 : vector<1x256xi32>
      %c0_i32_46 = arith.constant 0 : i32
      %99 = vector.broadcast %c0_i32_46 : i32 to vector<1x256xi32>
      %100 = arith.cmpi sge, %98, %99 : vector<1x256xi32>
      %c-1_i32_47 = arith.constant -1 : i32
      %101 = vector.broadcast %c-1_i32_47 : i32 to vector<1x256xi32>
      %102 = arith.addi %14, %101 : vector<1x256xi32>
      %c16_i32_48 = arith.constant 16 : i32
      %103 = vector.broadcast %c16_i32_48 : i32 to vector<1x256xi32>
      %104 = arith.cmpi slt, %102, %103 : vector<1x256xi32>
      %105 = arith.andi %100, %104 : vector<1x256xi1>
      %c0_i32_49 = arith.constant 0 : i32
      %106 = vector.broadcast %c0_i32_49 : i32 to vector<1x256xi32>
      %107 = arith.addi %14, %106 : vector<1x256xi32>
      %c0_i32_50 = arith.constant 0 : i32
      %108 = vector.broadcast %c0_i32_50 : i32 to vector<1x256xi32>
      %109 = arith.cmpi sge, %107, %108 : vector<1x256xi32>
      %c0_i32_51 = arith.constant 0 : i32
      %110 = vector.broadcast %c0_i32_51 : i32 to vector<1x256xi32>
      %111 = arith.addi %14, %110 : vector<1x256xi32>
      %c16_i32_52 = arith.constant 16 : i32
      %112 = vector.broadcast %c16_i32_52 : i32 to vector<1x256xi32>
      %113 = arith.cmpi slt, %111, %112 : vector<1x256xi32>
      %114 = arith.andi %109, %113 : vector<1x256xi1>
      %c1_i32_53 = arith.constant 1 : i32
      %115 = vector.broadcast %c1_i32_53 : i32 to vector<1x256xi32>
      %116 = arith.addi %14, %115 : vector<1x256xi32>
      %c0_i32_54 = arith.constant 0 : i32
      %117 = vector.broadcast %c0_i32_54 : i32 to vector<1x256xi32>
      %118 = arith.cmpi sge, %116, %117 : vector<1x256xi32>
      %c1_i32_55 = arith.constant 1 : i32
      %119 = vector.broadcast %c1_i32_55 : i32 to vector<1x256xi32>
      %120 = arith.addi %14, %119 : vector<1x256xi32>
      %c16_i32_56 = arith.constant 16 : i32
      %121 = vector.broadcast %c16_i32_56 : i32 to vector<1x256xi32>
      %122 = arith.cmpi slt, %120, %121 : vector<1x256xi32>
      %123 = arith.andi %118, %122 : vector<1x256xi1>
      %c2_i32_57 = arith.constant 2 : i32
      %124 = vector.broadcast %c2_i32_57 : i32 to vector<1x256xi32>
      %125 = arith.addi %14, %124 : vector<1x256xi32>
      %c0_i32_58 = arith.constant 0 : i32
      %126 = vector.broadcast %c0_i32_58 : i32 to vector<1x256xi32>
      %127 = arith.cmpi sge, %125, %126 : vector<1x256xi32>
      %c2_i32_59 = arith.constant 2 : i32
      %128 = vector.broadcast %c2_i32_59 : i32 to vector<1x256xi32>
      %129 = arith.addi %14, %128 : vector<1x256xi32>
      %c16_i32_60 = arith.constant 16 : i32
      %130 = vector.broadcast %c16_i32_60 : i32 to vector<1x256xi32>
      %131 = arith.cmpi slt, %129, %130 : vector<1x256xi32>
      %132 = arith.andi %127, %131 : vector<1x256xi1>
      %c3_i32_61 = arith.constant 3 : i32
      %133 = vector.broadcast %c3_i32_61 : i32 to vector<1x256xi32>
      %134 = arith.addi %14, %133 : vector<1x256xi32>
      %c0_i32_62 = arith.constant 0 : i32
      %135 = vector.broadcast %c0_i32_62 : i32 to vector<1x256xi32>
      %136 = arith.cmpi sge, %134, %135 : vector<1x256xi32>
      %c3_i32_63 = arith.constant 3 : i32
      %137 = vector.broadcast %c3_i32_63 : i32 to vector<1x256xi32>
      %138 = arith.addi %14, %137 : vector<1x256xi32>
      %c16_i32_64 = arith.constant 16 : i32
      %139 = vector.broadcast %c16_i32_64 : i32 to vector<1x256xi32>
      %140 = arith.cmpi slt, %138, %139 : vector<1x256xi32>
      %141 = arith.andi %136, %140 : vector<1x256xi1>
      %c3_i32_65 = arith.constant 3 : i32
      %142 = tpu.dynamic_rotate %12 by %c3_i32_65 dim 1 : vector<1x256xf32>, i32 -> vector<1x256xf32>
      %c3_i32_66 = arith.constant 3 : i32
      %143 = tpu.dynamic_rotate %13 by %c3_i32_66 dim 1 : vector<1x256xf32>, i32 -> vector<1x256xf32>
      %cst_67 = arith.constant 0.000000e+00 : f32
      %144 = vector.broadcast %cst_67 : f32 to vector<1x256xf32>
      %145 = arith.select %24, %142, %144 : vector<1x256xi1>, vector<1x256xf32>
      %cst_68 = arith.constant 0.000000e+00 : f32
      %146 = vector.broadcast %cst_68 : f32 to vector<1x256xf32>
      %147 = arith.select %24, %143, %146 : vector<1x256xi1>, vector<1x256xf32>
      %c0_69 = arith.constant 0 : index
      %148 = memref.load %arg2[%c0_69] : memref<98xf32, #tpu.memory_space<smem>>
      %c49 = arith.constant 49 : index
      %149 = memref.load %arg2[%c49] : memref<98xf32, #tpu.memory_space<smem>>
      %150 = vector.broadcast %148 : f32 to vector<1x256xf32>
      %151 = arith.mulf %150, %145 : vector<1x256xf32>
      %152 = vector.broadcast %149 : f32 to vector<1x256xf32>
      %153 = arith.mulf %152, %147 : vector<1x256xf32>
      %154 = arith.addf %151, %153 : vector<1x256xf32>
      %c7 = arith.constant 7 : index
      %155 = memref.load %arg2[%c7] : memref<98xf32, #tpu.memory_space<smem>>
      %c56 = arith.constant 56 : index
      %156 = memref.load %arg2[%c56] : memref<98xf32, #tpu.memory_space<smem>>
      %157 = vector.broadcast %155 : f32 to vector<1x256xf32>
      %158 = arith.mulf %157, %145 : vector<1x256xf32>
      %159 = vector.broadcast %156 : f32 to vector<1x256xf32>
      %160 = arith.mulf %159, %147 : vector<1x256xf32>
      %161 = arith.addf %158, %160 : vector<1x256xf32>
      %c14 = arith.constant 14 : index
      %162 = memref.load %arg2[%c14] : memref<98xf32, #tpu.memory_space<smem>>
      %c63 = arith.constant 63 : index
      %163 = memref.load %arg2[%c63] : memref<98xf32, #tpu.memory_space<smem>>
      %164 = vector.broadcast %162 : f32 to vector<1x256xf32>
      %165 = arith.mulf %164, %145 : vector<1x256xf32>
      %166 = vector.broadcast %163 : f32 to vector<1x256xf32>
      %167 = arith.mulf %166, %147 : vector<1x256xf32>
      %168 = arith.addf %165, %167 : vector<1x256xf32>
      %c21 = arith.constant 21 : index
      %169 = memref.load %arg2[%c21] : memref<98xf32, #tpu.memory_space<smem>>
      %c70 = arith.constant 70 : index
      %170 = memref.load %arg2[%c70] : memref<98xf32, #tpu.memory_space<smem>>
      %171 = vector.broadcast %169 : f32 to vector<1x256xf32>
      %172 = arith.mulf %171, %145 : vector<1x256xf32>
      %173 = vector.broadcast %170 : f32 to vector<1x256xf32>
      %174 = arith.mulf %173, %147 : vector<1x256xf32>
      %175 = arith.addf %172, %174 : vector<1x256xf32>
      %c28 = arith.constant 28 : index
      %176 = memref.load %arg2[%c28] : memref<98xf32, #tpu.memory_space<smem>>
      %c77 = arith.constant 77 : index
      %177 = memref.load %arg2[%c77] : memref<98xf32, #tpu.memory_space<smem>>
      %178 = vector.broadcast %176 : f32 to vector<1x256xf32>
      %179 = arith.mulf %178, %145 : vector<1x256xf32>
      %180 = vector.broadcast %177 : f32 to vector<1x256xf32>
      %181 = arith.mulf %180, %147 : vector<1x256xf32>
      %182 = arith.addf %179, %181 : vector<1x256xf32>
      %c35 = arith.constant 35 : index
      %183 = memref.load %arg2[%c35] : memref<98xf32, #tpu.memory_space<smem>>
      %c84 = arith.constant 84 : index
      %184 = memref.load %arg2[%c84] : memref<98xf32, #tpu.memory_space<smem>>
      %185 = vector.broadcast %183 : f32 to vector<1x256xf32>
      %186 = arith.mulf %185, %145 : vector<1x256xf32>
      %187 = vector.broadcast %184 : f32 to vector<1x256xf32>
      %188 = arith.mulf %187, %147 : vector<1x256xf32>
      %189 = arith.addf %186, %188 : vector<1x256xf32>
      %c42 = arith.constant 42 : index
      %190 = memref.load %arg2[%c42] : memref<98xf32, #tpu.memory_space<smem>>
      %c91 = arith.constant 91 : index
      %191 = memref.load %arg2[%c91] : memref<98xf32, #tpu.memory_space<smem>>
      %192 = vector.broadcast %190 : f32 to vector<1x256xf32>
      %193 = arith.mulf %192, %145 : vector<1x256xf32>
      %194 = vector.broadcast %191 : f32 to vector<1x256xf32>
      %195 = arith.mulf %194, %147 : vector<1x256xf32>
      %196 = arith.addf %193, %195 : vector<1x256xf32>
      %c2_i32_70 = arith.constant 2 : i32
      %197 = tpu.dynamic_rotate %12 by %c2_i32_70 dim 1 : vector<1x256xf32>, i32 -> vector<1x256xf32>
      %c2_i32_71 = arith.constant 2 : i32
      %198 = tpu.dynamic_rotate %13 by %c2_i32_71 dim 1 : vector<1x256xf32>, i32 -> vector<1x256xf32>
      %cst_72 = arith.constant 0.000000e+00 : f32
      %199 = vector.broadcast %cst_72 : f32 to vector<1x256xf32>
      %200 = arith.select %33, %197, %199 : vector<1x256xi1>, vector<1x256xf32>
      %cst_73 = arith.constant 0.000000e+00 : f32
      %201 = vector.broadcast %cst_73 : f32 to vector<1x256xf32>
      %202 = arith.select %33, %198, %201 : vector<1x256xi1>, vector<1x256xf32>
      %c1 = arith.constant 1 : index
      %203 = memref.load %arg2[%c1] : memref<98xf32, #tpu.memory_space<smem>>
      %c50 = arith.constant 50 : index
      %204 = memref.load %arg2[%c50] : memref<98xf32, #tpu.memory_space<smem>>
      %205 = vector.broadcast %203 : f32 to vector<1x256xf32>
      %206 = arith.mulf %205, %200 : vector<1x256xf32>
      %207 = vector.broadcast %204 : f32 to vector<1x256xf32>
      %208 = arith.mulf %207, %202 : vector<1x256xf32>
      %209 = arith.addf %206, %208 : vector<1x256xf32>
      %210 = arith.addf %154, %209 : vector<1x256xf32>
      %c8 = arith.constant 8 : index
      %211 = memref.load %arg2[%c8] : memref<98xf32, #tpu.memory_space<smem>>
      %c57 = arith.constant 57 : index
      %212 = memref.load %arg2[%c57] : memref<98xf32, #tpu.memory_space<smem>>
      %213 = vector.broadcast %211 : f32 to vector<1x256xf32>
      %214 = arith.mulf %213, %200 : vector<1x256xf32>
      %215 = vector.broadcast %212 : f32 to vector<1x256xf32>
      %216 = arith.mulf %215, %202 : vector<1x256xf32>
      %217 = arith.addf %214, %216 : vector<1x256xf32>
      %218 = arith.addf %161, %217 : vector<1x256xf32>
      %c15 = arith.constant 15 : index
      %219 = memref.load %arg2[%c15] : memref<98xf32, #tpu.memory_space<smem>>
      %c64 = arith.constant 64 : index
      %220 = memref.load %arg2[%c64] : memref<98xf32, #tpu.memory_space<smem>>
      %221 = vector.broadcast %219 : f32 to vector<1x256xf32>
      %222 = arith.mulf %221, %200 : vector<1x256xf32>
      %223 = vector.broadcast %220 : f32 to vector<1x256xf32>
      %224 = arith.mulf %223, %202 : vector<1x256xf32>
      %225 = arith.addf %222, %224 : vector<1x256xf32>
      %226 = arith.addf %168, %225 : vector<1x256xf32>
      %c22 = arith.constant 22 : index
      %227 = memref.load %arg2[%c22] : memref<98xf32, #tpu.memory_space<smem>>
      %c71 = arith.constant 71 : index
      %228 = memref.load %arg2[%c71] : memref<98xf32, #tpu.memory_space<smem>>
      %229 = vector.broadcast %227 : f32 to vector<1x256xf32>
      %230 = arith.mulf %229, %200 : vector<1x256xf32>
      %231 = vector.broadcast %228 : f32 to vector<1x256xf32>
      %232 = arith.mulf %231, %202 : vector<1x256xf32>
      %233 = arith.addf %230, %232 : vector<1x256xf32>
      %234 = arith.addf %175, %233 : vector<1x256xf32>
      %c29 = arith.constant 29 : index
      %235 = memref.load %arg2[%c29] : memref<98xf32, #tpu.memory_space<smem>>
      %c78 = arith.constant 78 : index
      %236 = memref.load %arg2[%c78] : memref<98xf32, #tpu.memory_space<smem>>
      %237 = vector.broadcast %235 : f32 to vector<1x256xf32>
      %238 = arith.mulf %237, %200 : vector<1x256xf32>
      %239 = vector.broadcast %236 : f32 to vector<1x256xf32>
      %240 = arith.mulf %239, %202 : vector<1x256xf32>
      %241 = arith.addf %238, %240 : vector<1x256xf32>
      %242 = arith.addf %182, %241 : vector<1x256xf32>
      %c36 = arith.constant 36 : index
      %243 = memref.load %arg2[%c36] : memref<98xf32, #tpu.memory_space<smem>>
      %c85 = arith.constant 85 : index
      %244 = memref.load %arg2[%c85] : memref<98xf32, #tpu.memory_space<smem>>
      %245 = vector.broadcast %243 : f32 to vector<1x256xf32>
      %246 = arith.mulf %245, %200 : vector<1x256xf32>
      %247 = vector.broadcast %244 : f32 to vector<1x256xf32>
      %248 = arith.mulf %247, %202 : vector<1x256xf32>
      %249 = arith.addf %246, %248 : vector<1x256xf32>
      %250 = arith.addf %189, %249 : vector<1x256xf32>
      %c43 = arith.constant 43 : index
      %251 = memref.load %arg2[%c43] : memref<98xf32, #tpu.memory_space<smem>>
      %c92 = arith.constant 92 : index
      %252 = memref.load %arg2[%c92] : memref<98xf32, #tpu.memory_space<smem>>
      %253 = vector.broadcast %251 : f32 to vector<1x256xf32>
      %254 = arith.mulf %253, %200 : vector<1x256xf32>
      %255 = vector.broadcast %252 : f32 to vector<1x256xf32>
      %256 = arith.mulf %255, %202 : vector<1x256xf32>
      %257 = arith.addf %254, %256 : vector<1x256xf32>
      %258 = arith.addf %196, %257 : vector<1x256xf32>
      %c1_i32_74 = arith.constant 1 : i32
      %259 = tpu.dynamic_rotate %12 by %c1_i32_74 dim 1 : vector<1x256xf32>, i32 -> vector<1x256xf32>
      %c1_i32_75 = arith.constant 1 : i32
      %260 = tpu.dynamic_rotate %13 by %c1_i32_75 dim 1 : vector<1x256xf32>, i32 -> vector<1x256xf32>
      %cst_76 = arith.constant 0.000000e+00 : f32
      %261 = vector.broadcast %cst_76 : f32 to vector<1x256xf32>
      %262 = arith.select %42, %259, %261 : vector<1x256xi1>, vector<1x256xf32>
      %cst_77 = arith.constant 0.000000e+00 : f32
      %263 = vector.broadcast %cst_77 : f32 to vector<1x256xf32>
      %264 = arith.select %42, %260, %263 : vector<1x256xi1>, vector<1x256xf32>
      %c2 = arith.constant 2 : index
      %265 = memref.load %arg2[%c2] : memref<98xf32, #tpu.memory_space<smem>>
      %c51 = arith.constant 51 : index
      %266 = memref.load %arg2[%c51] : memref<98xf32, #tpu.memory_space<smem>>
      %267 = vector.broadcast %265 : f32 to vector<1x256xf32>
      %268 = arith.mulf %267, %262 : vector<1x256xf32>
      %269 = vector.broadcast %266 : f32 to vector<1x256xf32>
      %270 = arith.mulf %269, %264 : vector<1x256xf32>
      %271 = arith.addf %268, %270 : vector<1x256xf32>
      %272 = arith.addf %210, %271 : vector<1x256xf32>
      %c9 = arith.constant 9 : index
      %273 = memref.load %arg2[%c9] : memref<98xf32, #tpu.memory_space<smem>>
      %c58 = arith.constant 58 : index
      %274 = memref.load %arg2[%c58] : memref<98xf32, #tpu.memory_space<smem>>
      %275 = vector.broadcast %273 : f32 to vector<1x256xf32>
      %276 = arith.mulf %275, %262 : vector<1x256xf32>
      %277 = vector.broadcast %274 : f32 to vector<1x256xf32>
      %278 = arith.mulf %277, %264 : vector<1x256xf32>
      %279 = arith.addf %276, %278 : vector<1x256xf32>
      %280 = arith.addf %218, %279 : vector<1x256xf32>
      %c16 = arith.constant 16 : index
      %281 = memref.load %arg2[%c16] : memref<98xf32, #tpu.memory_space<smem>>
      %c65 = arith.constant 65 : index
      %282 = memref.load %arg2[%c65] : memref<98xf32, #tpu.memory_space<smem>>
      %283 = vector.broadcast %281 : f32 to vector<1x256xf32>
      %284 = arith.mulf %283, %262 : vector<1x256xf32>
      %285 = vector.broadcast %282 : f32 to vector<1x256xf32>
      %286 = arith.mulf %285, %264 : vector<1x256xf32>
      %287 = arith.addf %284, %286 : vector<1x256xf32>
      %288 = arith.addf %226, %287 : vector<1x256xf32>
      %c23 = arith.constant 23 : index
      %289 = memref.load %arg2[%c23] : memref<98xf32, #tpu.memory_space<smem>>
      %c72 = arith.constant 72 : index
      %290 = memref.load %arg2[%c72] : memref<98xf32, #tpu.memory_space<smem>>
      %291 = vector.broadcast %289 : f32 to vector<1x256xf32>
      %292 = arith.mulf %291, %262 : vector<1x256xf32>
      %293 = vector.broadcast %290 : f32 to vector<1x256xf32>
      %294 = arith.mulf %293, %264 : vector<1x256xf32>
      %295 = arith.addf %292, %294 : vector<1x256xf32>
      %296 = arith.addf %234, %295 : vector<1x256xf32>
      %c30 = arith.constant 30 : index
      %297 = memref.load %arg2[%c30] : memref<98xf32, #tpu.memory_space<smem>>
      %c79 = arith.constant 79 : index
      %298 = memref.load %arg2[%c79] : memref<98xf32, #tpu.memory_space<smem>>
      %299 = vector.broadcast %297 : f32 to vector<1x256xf32>
      %300 = arith.mulf %299, %262 : vector<1x256xf32>
      %301 = vector.broadcast %298 : f32 to vector<1x256xf32>
      %302 = arith.mulf %301, %264 : vector<1x256xf32>
      %303 = arith.addf %300, %302 : vector<1x256xf32>
      %304 = arith.addf %242, %303 : vector<1x256xf32>
      %c37 = arith.constant 37 : index
      %305 = memref.load %arg2[%c37] : memref<98xf32, #tpu.memory_space<smem>>
      %c86 = arith.constant 86 : index
      %306 = memref.load %arg2[%c86] : memref<98xf32, #tpu.memory_space<smem>>
      %307 = vector.broadcast %305 : f32 to vector<1x256xf32>
      %308 = arith.mulf %307, %262 : vector<1x256xf32>
      %309 = vector.broadcast %306 : f32 to vector<1x256xf32>
      %310 = arith.mulf %309, %264 : vector<1x256xf32>
      %311 = arith.addf %308, %310 : vector<1x256xf32>
      %312 = arith.addf %250, %311 : vector<1x256xf32>
      %c44 = arith.constant 44 : index
      %313 = memref.load %arg2[%c44] : memref<98xf32, #tpu.memory_space<smem>>
      %c93 = arith.constant 93 : index
      %314 = memref.load %arg2[%c93] : memref<98xf32, #tpu.memory_space<smem>>
      %315 = vector.broadcast %313 : f32 to vector<1x256xf32>
      %316 = arith.mulf %315, %262 : vector<1x256xf32>
      %317 = vector.broadcast %314 : f32 to vector<1x256xf32>
      %318 = arith.mulf %317, %264 : vector<1x256xf32>
      %319 = arith.addf %316, %318 : vector<1x256xf32>
      %320 = arith.addf %258, %319 : vector<1x256xf32>
      %cst_78 = arith.constant 0.000000e+00 : f32
      %321 = vector.broadcast %cst_78 : f32 to vector<1x256xf32>
      %322 = arith.select %51, %12, %321 : vector<1x256xi1>, vector<1x256xf32>
      %cst_79 = arith.constant 0.000000e+00 : f32
      %323 = vector.broadcast %cst_79 : f32 to vector<1x256xf32>
      %324 = arith.select %51, %13, %323 : vector<1x256xi1>, vector<1x256xf32>
      %c3 = arith.constant 3 : index
      %325 = memref.load %arg2[%c3] : memref<98xf32, #tpu.memory_space<smem>>
      %c52 = arith.constant 52 : index
      %326 = memref.load %arg2[%c52] : memref<98xf32, #tpu.memory_space<smem>>
      %327 = vector.broadcast %325 : f32 to vector<1x256xf32>
      %328 = arith.mulf %327, %322 : vector<1x256xf32>
      %329 = vector.broadcast %326 : f32 to vector<1x256xf32>
      %330 = arith.mulf %329, %324 : vector<1x256xf32>
      %331 = arith.addf %328, %330 : vector<1x256xf32>
      %332 = arith.addf %272, %331 : vector<1x256xf32>
      %c10 = arith.constant 10 : index
      %333 = memref.load %arg2[%c10] : memref<98xf32, #tpu.memory_space<smem>>
      %c59 = arith.constant 59 : index
      %334 = memref.load %arg2[%c59] : memref<98xf32, #tpu.memory_space<smem>>
      %335 = vector.broadcast %333 : f32 to vector<1x256xf32>
      %336 = arith.mulf %335, %322 : vector<1x256xf32>
      %337 = vector.broadcast %334 : f32 to vector<1x256xf32>
      %338 = arith.mulf %337, %324 : vector<1x256xf32>
      %339 = arith.addf %336, %338 : vector<1x256xf32>
      %340 = arith.addf %280, %339 : vector<1x256xf32>
      %c17 = arith.constant 17 : index
      %341 = memref.load %arg2[%c17] : memref<98xf32, #tpu.memory_space<smem>>
      %c66 = arith.constant 66 : index
      %342 = memref.load %arg2[%c66] : memref<98xf32, #tpu.memory_space<smem>>
      %343 = vector.broadcast %341 : f32 to vector<1x256xf32>
      %344 = arith.mulf %343, %322 : vector<1x256xf32>
      %345 = vector.broadcast %342 : f32 to vector<1x256xf32>
      %346 = arith.mulf %345, %324 : vector<1x256xf32>
      %347 = arith.addf %344, %346 : vector<1x256xf32>
      %348 = arith.addf %288, %347 : vector<1x256xf32>
      %c24 = arith.constant 24 : index
      %349 = memref.load %arg2[%c24] : memref<98xf32, #tpu.memory_space<smem>>
      %c73 = arith.constant 73 : index
      %350 = memref.load %arg2[%c73] : memref<98xf32, #tpu.memory_space<smem>>
      %351 = vector.broadcast %349 : f32 to vector<1x256xf32>
      %352 = arith.mulf %351, %322 : vector<1x256xf32>
      %353 = vector.broadcast %350 : f32 to vector<1x256xf32>
      %354 = arith.mulf %353, %324 : vector<1x256xf32>
      %355 = arith.addf %352, %354 : vector<1x256xf32>
      %356 = arith.addf %296, %355 : vector<1x256xf32>
      %c31 = arith.constant 31 : index
      %357 = memref.load %arg2[%c31] : memref<98xf32, #tpu.memory_space<smem>>
      %c80 = arith.constant 80 : index
      %358 = memref.load %arg2[%c80] : memref<98xf32, #tpu.memory_space<smem>>
      %359 = vector.broadcast %357 : f32 to vector<1x256xf32>
      %360 = arith.mulf %359, %322 : vector<1x256xf32>
      %361 = vector.broadcast %358 : f32 to vector<1x256xf32>
      %362 = arith.mulf %361, %324 : vector<1x256xf32>
      %363 = arith.addf %360, %362 : vector<1x256xf32>
      %364 = arith.addf %304, %363 : vector<1x256xf32>
      %c38 = arith.constant 38 : index
      %365 = memref.load %arg2[%c38] : memref<98xf32, #tpu.memory_space<smem>>
      %c87 = arith.constant 87 : index
      %366 = memref.load %arg2[%c87] : memref<98xf32, #tpu.memory_space<smem>>
      %367 = vector.broadcast %365 : f32 to vector<1x256xf32>
      %368 = arith.mulf %367, %322 : vector<1x256xf32>
      %369 = vector.broadcast %366 : f32 to vector<1x256xf32>
      %370 = arith.mulf %369, %324 : vector<1x256xf32>
      %371 = arith.addf %368, %370 : vector<1x256xf32>
      %372 = arith.addf %312, %371 : vector<1x256xf32>
      %c45 = arith.constant 45 : index
      %373 = memref.load %arg2[%c45] : memref<98xf32, #tpu.memory_space<smem>>
      %c94 = arith.constant 94 : index
      %374 = memref.load %arg2[%c94] : memref<98xf32, #tpu.memory_space<smem>>
      %375 = vector.broadcast %373 : f32 to vector<1x256xf32>
      %376 = arith.mulf %375, %322 : vector<1x256xf32>
      %377 = vector.broadcast %374 : f32 to vector<1x256xf32>
      %378 = arith.mulf %377, %324 : vector<1x256xf32>
      %379 = arith.addf %376, %378 : vector<1x256xf32>
      %380 = arith.addf %320, %379 : vector<1x256xf32>
      %c255_i32 = arith.constant 255 : i32
      %381 = tpu.dynamic_rotate %12 by %c255_i32 dim 1 : vector<1x256xf32>, i32 -> vector<1x256xf32>
      %c255_i32_80 = arith.constant 255 : i32
      %382 = tpu.dynamic_rotate %13 by %c255_i32_80 dim 1 : vector<1x256xf32>, i32 -> vector<1x256xf32>
      %cst_81 = arith.constant 0.000000e+00 : f32
      %383 = vector.broadcast %cst_81 : f32 to vector<1x256xf32>
      %384 = arith.select %60, %381, %383 : vector<1x256xi1>, vector<1x256xf32>
      %cst_82 = arith.constant 0.000000e+00 : f32
      %385 = vector.broadcast %cst_82 : f32 to vector<1x256xf32>
      %386 = arith.select %60, %382, %385 : vector<1x256xi1>, vector<1x256xf32>
      %c4 = arith.constant 4 : index
      %387 = memref.load %arg2[%c4] : memref<98xf32, #tpu.memory_space<smem>>
      %c53 = arith.constant 53 : index
      %388 = memref.load %arg2[%c53] : memref<98xf32, #tpu.memory_space<smem>>
      %389 = vector.broadcast %387 : f32 to vector<1x256xf32>
      %390 = arith.mulf %389, %384 : vector<1x256xf32>
      %391 = vector.broadcast %388 : f32 to vector<1x256xf32>
      %392 = arith.mulf %391, %386 : vector<1x256xf32>
      %393 = arith.addf %390, %392 : vector<1x256xf32>
      %394 = arith.addf %332, %393 : vector<1x256xf32>
      %c11 = arith.constant 11 : index
      %395 = memref.load %arg2[%c11] : memref<98xf32, #tpu.memory_space<smem>>
      %c60 = arith.constant 60 : index
      %396 = memref.load %arg2[%c60] : memref<98xf32, #tpu.memory_space<smem>>
      %397 = vector.broadcast %395 : f32 to vector<1x256xf32>
      %398 = arith.mulf %397, %384 : vector<1x256xf32>
      %399 = vector.broadcast %396 : f32 to vector<1x256xf32>
      %400 = arith.mulf %399, %386 : vector<1x256xf32>
      %401 = arith.addf %398, %400 : vector<1x256xf32>
      %402 = arith.addf %340, %401 : vector<1x256xf32>
      %c18 = arith.constant 18 : index
      %403 = memref.load %arg2[%c18] : memref<98xf32, #tpu.memory_space<smem>>
      %c67 = arith.constant 67 : index
      %404 = memref.load %arg2[%c67] : memref<98xf32, #tpu.memory_space<smem>>
      %405 = vector.broadcast %403 : f32 to vector<1x256xf32>
      %406 = arith.mulf %405, %384 : vector<1x256xf32>
      %407 = vector.broadcast %404 : f32 to vector<1x256xf32>
      %408 = arith.mulf %407, %386 : vector<1x256xf32>
      %409 = arith.addf %406, %408 : vector<1x256xf32>
      %410 = arith.addf %348, %409 : vector<1x256xf32>
      %c25 = arith.constant 25 : index
      %411 = memref.load %arg2[%c25] : memref<98xf32, #tpu.memory_space<smem>>
      %c74 = arith.constant 74 : index
      %412 = memref.load %arg2[%c74] : memref<98xf32, #tpu.memory_space<smem>>
      %413 = vector.broadcast %411 : f32 to vector<1x256xf32>
      %414 = arith.mulf %413, %384 : vector<1x256xf32>
      %415 = vector.broadcast %412 : f32 to vector<1x256xf32>
      %416 = arith.mulf %415, %386 : vector<1x256xf32>
      %417 = arith.addf %414, %416 : vector<1x256xf32>
      %418 = arith.addf %356, %417 : vector<1x256xf32>
      %c32 = arith.constant 32 : index
      %419 = memref.load %arg2[%c32] : memref<98xf32, #tpu.memory_space<smem>>
      %c81 = arith.constant 81 : index
      %420 = memref.load %arg2[%c81] : memref<98xf32, #tpu.memory_space<smem>>
      %421 = vector.broadcast %419 : f32 to vector<1x256xf32>
      %422 = arith.mulf %421, %384 : vector<1x256xf32>
      %423 = vector.broadcast %420 : f32 to vector<1x256xf32>
      %424 = arith.mulf %423, %386 : vector<1x256xf32>
      %425 = arith.addf %422, %424 : vector<1x256xf32>
      %426 = arith.addf %364, %425 : vector<1x256xf32>
      %c39 = arith.constant 39 : index
      %427 = memref.load %arg2[%c39] : memref<98xf32, #tpu.memory_space<smem>>
      %c88 = arith.constant 88 : index
      %428 = memref.load %arg2[%c88] : memref<98xf32, #tpu.memory_space<smem>>
      %429 = vector.broadcast %427 : f32 to vector<1x256xf32>
      %430 = arith.mulf %429, %384 : vector<1x256xf32>
      %431 = vector.broadcast %428 : f32 to vector<1x256xf32>
      %432 = arith.mulf %431, %386 : vector<1x256xf32>
      %433 = arith.addf %430, %432 : vector<1x256xf32>
      %434 = arith.addf %372, %433 : vector<1x256xf32>
      %c46 = arith.constant 46 : index
      %435 = memref.load %arg2[%c46] : memref<98xf32, #tpu.memory_space<smem>>
      %c95 = arith.constant 95 : index
      %436 = memref.load %arg2[%c95] : memref<98xf32, #tpu.memory_space<smem>>
      %437 = vector.broadcast %435 : f32 to vector<1x256xf32>
      %438 = arith.mulf %437, %384 : vector<1x256xf32>
      %439 = vector.broadcast %436 : f32 to vector<1x256xf32>
      %440 = arith.mulf %439, %386 : vector<1x256xf32>
      %441 = arith.addf %438, %440 : vector<1x256xf32>
      %442 = arith.addf %380, %441 : vector<1x256xf32>
      %c254_i32 = arith.constant 254 : i32
      %443 = tpu.dynamic_rotate %12 by %c254_i32 dim 1 : vector<1x256xf32>, i32 -> vector<1x256xf32>
      %c254_i32_83 = arith.constant 254 : i32
      %444 = tpu.dynamic_rotate %13 by %c254_i32_83 dim 1 : vector<1x256xf32>, i32 -> vector<1x256xf32>
      %cst_84 = arith.constant 0.000000e+00 : f32
      %445 = vector.broadcast %cst_84 : f32 to vector<1x256xf32>
      %446 = arith.select %69, %443, %445 : vector<1x256xi1>, vector<1x256xf32>
      %cst_85 = arith.constant 0.000000e+00 : f32
      %447 = vector.broadcast %cst_85 : f32 to vector<1x256xf32>
      %448 = arith.select %69, %444, %447 : vector<1x256xi1>, vector<1x256xf32>
      %c5 = arith.constant 5 : index
      %449 = memref.load %arg2[%c5] : memref<98xf32, #tpu.memory_space<smem>>
      %c54 = arith.constant 54 : index
      %450 = memref.load %arg2[%c54] : memref<98xf32, #tpu.memory_space<smem>>
      %451 = vector.broadcast %449 : f32 to vector<1x256xf32>
      %452 = arith.mulf %451, %446 : vector<1x256xf32>
      %453 = vector.broadcast %450 : f32 to vector<1x256xf32>
      %454 = arith.mulf %453, %448 : vector<1x256xf32>
      %455 = arith.addf %452, %454 : vector<1x256xf32>
      %456 = arith.addf %394, %455 : vector<1x256xf32>
      %c12 = arith.constant 12 : index
      %457 = memref.load %arg2[%c12] : memref<98xf32, #tpu.memory_space<smem>>
      %c61 = arith.constant 61 : index
      %458 = memref.load %arg2[%c61] : memref<98xf32, #tpu.memory_space<smem>>
      %459 = vector.broadcast %457 : f32 to vector<1x256xf32>
      %460 = arith.mulf %459, %446 : vector<1x256xf32>
      %461 = vector.broadcast %458 : f32 to vector<1x256xf32>
      %462 = arith.mulf %461, %448 : vector<1x256xf32>
      %463 = arith.addf %460, %462 : vector<1x256xf32>
      %464 = arith.addf %402, %463 : vector<1x256xf32>
      %c19 = arith.constant 19 : index
      %465 = memref.load %arg2[%c19] : memref<98xf32, #tpu.memory_space<smem>>
      %c68 = arith.constant 68 : index
      %466 = memref.load %arg2[%c68] : memref<98xf32, #tpu.memory_space<smem>>
      %467 = vector.broadcast %465 : f32 to vector<1x256xf32>
      %468 = arith.mulf %467, %446 : vector<1x256xf32>
      %469 = vector.broadcast %466 : f32 to vector<1x256xf32>
      %470 = arith.mulf %469, %448 : vector<1x256xf32>
      %471 = arith.addf %468, %470 : vector<1x256xf32>
      %472 = arith.addf %410, %471 : vector<1x256xf32>
      %c26 = arith.constant 26 : index
      %473 = memref.load %arg2[%c26] : memref<98xf32, #tpu.memory_space<smem>>
      %c75 = arith.constant 75 : index
      %474 = memref.load %arg2[%c75] : memref<98xf32, #tpu.memory_space<smem>>
      %475 = vector.broadcast %473 : f32 to vector<1x256xf32>
      %476 = arith.mulf %475, %446 : vector<1x256xf32>
      %477 = vector.broadcast %474 : f32 to vector<1x256xf32>
      %478 = arith.mulf %477, %448 : vector<1x256xf32>
      %479 = arith.addf %476, %478 : vector<1x256xf32>
      %480 = arith.addf %418, %479 : vector<1x256xf32>
      %c33 = arith.constant 33 : index
      %481 = memref.load %arg2[%c33] : memref<98xf32, #tpu.memory_space<smem>>
      %c82 = arith.constant 82 : index
      %482 = memref.load %arg2[%c82] : memref<98xf32, #tpu.memory_space<smem>>
      %483 = vector.broadcast %481 : f32 to vector<1x256xf32>
      %484 = arith.mulf %483, %446 : vector<1x256xf32>
      %485 = vector.broadcast %482 : f32 to vector<1x256xf32>
      %486 = arith.mulf %485, %448 : vector<1x256xf32>
      %487 = arith.addf %484, %486 : vector<1x256xf32>
      %488 = arith.addf %426, %487 : vector<1x256xf32>
      %c40 = arith.constant 40 : index
      %489 = memref.load %arg2[%c40] : memref<98xf32, #tpu.memory_space<smem>>
      %c89 = arith.constant 89 : index
      %490 = memref.load %arg2[%c89] : memref<98xf32, #tpu.memory_space<smem>>
      %491 = vector.broadcast %489 : f32 to vector<1x256xf32>
      %492 = arith.mulf %491, %446 : vector<1x256xf32>
      %493 = vector.broadcast %490 : f32 to vector<1x256xf32>
      %494 = arith.mulf %493, %448 : vector<1x256xf32>
      %495 = arith.addf %492, %494 : vector<1x256xf32>
      %496 = arith.addf %434, %495 : vector<1x256xf32>
      %c47 = arith.constant 47 : index
      %497 = memref.load %arg2[%c47] : memref<98xf32, #tpu.memory_space<smem>>
      %c96 = arith.constant 96 : index
      %498 = memref.load %arg2[%c96] : memref<98xf32, #tpu.memory_space<smem>>
      %499 = vector.broadcast %497 : f32 to vector<1x256xf32>
      %500 = arith.mulf %499, %446 : vector<1x256xf32>
      %501 = vector.broadcast %498 : f32 to vector<1x256xf32>
      %502 = arith.mulf %501, %448 : vector<1x256xf32>
      %503 = arith.addf %500, %502 : vector<1x256xf32>
      %504 = arith.addf %442, %503 : vector<1x256xf32>
      %c253_i32 = arith.constant 253 : i32
      %505 = tpu.dynamic_rotate %12 by %c253_i32 dim 1 : vector<1x256xf32>, i32 -> vector<1x256xf32>
      %c253_i32_86 = arith.constant 253 : i32
      %506 = tpu.dynamic_rotate %13 by %c253_i32_86 dim 1 : vector<1x256xf32>, i32 -> vector<1x256xf32>
      %cst_87 = arith.constant 0.000000e+00 : f32
      %507 = vector.broadcast %cst_87 : f32 to vector<1x256xf32>
      %508 = arith.select %78, %505, %507 : vector<1x256xi1>, vector<1x256xf32>
      %cst_88 = arith.constant 0.000000e+00 : f32
      %509 = vector.broadcast %cst_88 : f32 to vector<1x256xf32>
      %510 = arith.select %78, %506, %509 : vector<1x256xi1>, vector<1x256xf32>
      %c6 = arith.constant 6 : index
      %511 = memref.load %arg2[%c6] : memref<98xf32, #tpu.memory_space<smem>>
      %c55 = arith.constant 55 : index
      %512 = memref.load %arg2[%c55] : memref<98xf32, #tpu.memory_space<smem>>
      %513 = vector.broadcast %511 : f32 to vector<1x256xf32>
      %514 = arith.mulf %513, %508 : vector<1x256xf32>
      %515 = vector.broadcast %512 : f32 to vector<1x256xf32>
      %516 = arith.mulf %515, %510 : vector<1x256xf32>
      %517 = arith.addf %514, %516 : vector<1x256xf32>
      %518 = arith.addf %456, %517 : vector<1x256xf32>
      %c13 = arith.constant 13 : index
      %519 = memref.load %arg2[%c13] : memref<98xf32, #tpu.memory_space<smem>>
      %c62 = arith.constant 62 : index
      %520 = memref.load %arg2[%c62] : memref<98xf32, #tpu.memory_space<smem>>
      %521 = vector.broadcast %519 : f32 to vector<1x256xf32>
      %522 = arith.mulf %521, %508 : vector<1x256xf32>
      %523 = vector.broadcast %520 : f32 to vector<1x256xf32>
      %524 = arith.mulf %523, %510 : vector<1x256xf32>
      %525 = arith.addf %522, %524 : vector<1x256xf32>
      %526 = arith.addf %464, %525 : vector<1x256xf32>
      %c20 = arith.constant 20 : index
      %527 = memref.load %arg2[%c20] : memref<98xf32, #tpu.memory_space<smem>>
      %c69 = arith.constant 69 : index
      %528 = memref.load %arg2[%c69] : memref<98xf32, #tpu.memory_space<smem>>
      %529 = vector.broadcast %527 : f32 to vector<1x256xf32>
      %530 = arith.mulf %529, %508 : vector<1x256xf32>
      %531 = vector.broadcast %528 : f32 to vector<1x256xf32>
      %532 = arith.mulf %531, %510 : vector<1x256xf32>
      %533 = arith.addf %530, %532 : vector<1x256xf32>
      %534 = arith.addf %472, %533 : vector<1x256xf32>
      %c27 = arith.constant 27 : index
      %535 = memref.load %arg2[%c27] : memref<98xf32, #tpu.memory_space<smem>>
      %c76 = arith.constant 76 : index
      %536 = memref.load %arg2[%c76] : memref<98xf32, #tpu.memory_space<smem>>
      %537 = vector.broadcast %535 : f32 to vector<1x256xf32>
      %538 = arith.mulf %537, %508 : vector<1x256xf32>
      %539 = vector.broadcast %536 : f32 to vector<1x256xf32>
      %540 = arith.mulf %539, %510 : vector<1x256xf32>
      %541 = arith.addf %538, %540 : vector<1x256xf32>
      %542 = arith.addf %480, %541 : vector<1x256xf32>
      %c34 = arith.constant 34 : index
      %543 = memref.load %arg2[%c34] : memref<98xf32, #tpu.memory_space<smem>>
      %c83 = arith.constant 83 : index
      %544 = memref.load %arg2[%c83] : memref<98xf32, #tpu.memory_space<smem>>
      %545 = vector.broadcast %543 : f32 to vector<1x256xf32>
      %546 = arith.mulf %545, %508 : vector<1x256xf32>
      %547 = vector.broadcast %544 : f32 to vector<1x256xf32>
      %548 = arith.mulf %547, %510 : vector<1x256xf32>
      %549 = arith.addf %546, %548 : vector<1x256xf32>
      %550 = arith.addf %488, %549 : vector<1x256xf32>
      %c41 = arith.constant 41 : index
      %551 = memref.load %arg2[%c41] : memref<98xf32, #tpu.memory_space<smem>>
      %c90 = arith.constant 90 : index
      %552 = memref.load %arg2[%c90] : memref<98xf32, #tpu.memory_space<smem>>
      %553 = vector.broadcast %551 : f32 to vector<1x256xf32>
      %554 = arith.mulf %553, %508 : vector<1x256xf32>
      %555 = vector.broadcast %552 : f32 to vector<1x256xf32>
      %556 = arith.mulf %555, %510 : vector<1x256xf32>
      %557 = arith.addf %554, %556 : vector<1x256xf32>
      %558 = arith.addf %496, %557 : vector<1x256xf32>
      %c48 = arith.constant 48 : index
      %559 = memref.load %arg2[%c48] : memref<98xf32, #tpu.memory_space<smem>>
      %c97 = arith.constant 97 : index
      %560 = memref.load %arg2[%c97] : memref<98xf32, #tpu.memory_space<smem>>
      %561 = vector.broadcast %559 : f32 to vector<1x256xf32>
      %562 = arith.mulf %561, %508 : vector<1x256xf32>
      %563 = vector.broadcast %560 : f32 to vector<1x256xf32>
      %564 = arith.mulf %563, %510 : vector<1x256xf32>
      %565 = arith.addf %562, %564 : vector<1x256xf32>
      %566 = arith.addf %504, %565 : vector<1x256xf32>
      %c48_i32 = arith.constant 48 : i32
      %567 = tpu.dynamic_rotate %518 by %c48_i32 dim 1 : vector<1x256xf32>, i32 -> vector<1x256xf32>
      %cst_89 = arith.constant 0.000000e+00 : f32
      %568 = vector.broadcast %cst_89 : f32 to vector<1x256xf32>
      %569 = arith.select %87, %567, %568 : vector<1x256xi1>, vector<1x256xf32>
      %c32_i32 = arith.constant 32 : i32
      %570 = tpu.dynamic_rotate %526 by %c32_i32 dim 1 : vector<1x256xf32>, i32 -> vector<1x256xf32>
      %cst_90 = arith.constant 0.000000e+00 : f32
      %571 = vector.broadcast %cst_90 : f32 to vector<1x256xf32>
      %572 = arith.select %96, %570, %571 : vector<1x256xi1>, vector<1x256xf32>
      %573 = arith.addf %569, %572 : vector<1x256xf32>
      %c16_i32_91 = arith.constant 16 : i32
      %574 = tpu.dynamic_rotate %534 by %c16_i32_91 dim 1 : vector<1x256xf32>, i32 -> vector<1x256xf32>
      %cst_92 = arith.constant 0.000000e+00 : f32
      %575 = vector.broadcast %cst_92 : f32 to vector<1x256xf32>
      %576 = arith.select %105, %574, %575 : vector<1x256xi1>, vector<1x256xf32>
      %577 = arith.addf %573, %576 : vector<1x256xf32>
      %cst_93 = arith.constant 0.000000e+00 : f32
      %578 = vector.broadcast %cst_93 : f32 to vector<1x256xf32>
      %579 = arith.select %114, %542, %578 : vector<1x256xi1>, vector<1x256xf32>
      %580 = arith.addf %577, %579 : vector<1x256xf32>
      %c240_i32 = arith.constant 240 : i32
      %581 = tpu.dynamic_rotate %550 by %c240_i32 dim 1 : vector<1x256xf32>, i32 -> vector<1x256xf32>
      %cst_94 = arith.constant 0.000000e+00 : f32
      %582 = vector.broadcast %cst_94 : f32 to vector<1x256xf32>
      %583 = arith.select %123, %581, %582 : vector<1x256xi1>, vector<1x256xf32>
      %584 = arith.addf %580, %583 : vector<1x256xf32>
      %c224_i32 = arith.constant 224 : i32
      %585 = tpu.dynamic_rotate %558 by %c224_i32 dim 1 : vector<1x256xf32>, i32 -> vector<1x256xf32>
      %cst_95 = arith.constant 0.000000e+00 : f32
      %586 = vector.broadcast %cst_95 : f32 to vector<1x256xf32>
      %587 = arith.select %132, %585, %586 : vector<1x256xi1>, vector<1x256xf32>
      %588 = arith.addf %584, %587 : vector<1x256xf32>
      %c208_i32 = arith.constant 208 : i32
      %589 = tpu.dynamic_rotate %566 by %c208_i32 dim 1 : vector<1x256xf32>, i32 -> vector<1x256xf32>
      %cst_96 = arith.constant 0.000000e+00 : f32
      %590 = vector.broadcast %cst_96 : f32 to vector<1x256xf32>
      %591 = arith.select %141, %589, %590 : vector<1x256xi1>, vector<1x256xf32>
      %592 = arith.addf %588, %591 : vector<1x256xf32>
      %593 = arith.negf %592 : vector<1x256xf32>
      %594 = math.exp %593 : vector<1x256xf32>
      %cst_97 = arith.constant 1.000000e+00 : f32
      %595 = vector.broadcast %cst_97 : f32 to vector<1x256xf32>
      %596 = arith.addf %595, %594 : vector<1x256xf32>
      %597 = arith.divf %595, %596 : vector<1x256xf32>
      %598 = vector.shape_cast %597 : vector<1x256xf32> to vector<1x1x256xf32>
      %c0_98 = arith.constant 0 : index
      %c0_99 = arith.constant 0 : index
      %c0_100 = arith.constant 0 : index
      %599 = vector.load %arg6[%c0_98, %c0_99, %c0_100] : memref<1x1x256xf32, #tpu.memory_space<vmem>>, vector<1x1x256xf32>
      tpu.vector_store %arg6[%c0_98, %c0_99, %c0_100], %598 {strides = array<i32>} : memref<1x1x256xf32, #tpu.memory_space<vmem>>, vector<1x1x256xf32>,
    } else {
    }
    return
  }
  func.func @transform_0(%arg0: i32, %arg1: i32) -> i32 {
    %c0_i32 = arith.constant 0 : i32
    %c0_i32_0 = arith.constant 0 : i32
    return %c0_i32 : i32
  }
  func.func @transform_1(%arg0: i32, %arg1: i32) -> (i32, i32) {
    %c0_i32 = arith.constant 0 : i32
    %c0_i32_0 = arith.constant 0 : i32
    %c0_i32_1 = arith.constant 0 : i32
    return %c0_i32, %c0_i32_0 : i32, i32
  }
  func.func @transform_2(%arg0: i32, %arg1: i32) -> (i32, i32) {
    %c0_i32 = arith.constant 0 : i32
    %c0_i32_0 = arith.constant 0 : i32
    %c0_i32_1 = arith.constant 0 : i32
    return %c0_i32, %c0_i32_0 : i32, i32
  }
  func.func @transform_3(%arg0: i32, %arg1: i32) -> (i32, i32, i32) {
    %c0_i32 = arith.constant 0 : i32
    %c0_i32_0 = arith.constant 0 : i32
    return %arg0, %arg1, %c0_i32 : i32, i32, i32
  }
  func.func @transform_4(%arg0: i32, %arg1: i32) -> (i32, i32, i32) {
    %c0_i32 = arith.constant 0 : i32
    %c0_i32_0 = arith.constant 0 : i32
    %c0_i32_1 = arith.constant 0 : i32
    return %arg0, %c0_i32, %c0_i32_0 : i32, i32, i32
  }
}

</mosaic_0001>

<bundles_post_ra>
// kernel: tpu_custom_call.1
= control target key start
LH: loop header
LB: loop body
LE: loop exit
PB: predicated region body
PF: predicated region fallthrough
CT: control target
= control target key end

     0   :  { %s2951_s0 = inlined_call_operand.hbm [shape: f32[98], index: 0, kind: input, shape index: {}]   ;;  %s2952_s1 = inlined_call_operand.vmem [shape: s32[1,256], index: 1, kind: input, shape index: {}]   ;;  %s2953_s2 = inlined_call_operand.vmem [shape: s32[1,256], index: 2, kind: input, shape index: {}]   ;;  %s2954_s3 = inlined_call_operand.hbm [shape: f32[2,4,256], index: 3, kind: input, shape index: {}]   ;;  %s2955_s4 = inlined_call_operand.hbm [shape: f32[2,1,256], index: 4, kind: output, shape index: {}]  }
   0x1   :  { %3039 = sst [smem:[#allocation85_spill]] %s2951_s0 }
   0x2   :  { %3040 = sst [smem:[#allocation86_spill]] %s2952_s1 }
   0x3   :  { %3041 = sst [smem:[#allocation87_spill]] %s2953_s2 }
   0x4   :  { %3042 = sst [smem:[#allocation88_spill]] %s2954_s3 }
   0x5   :  { %3043 = sst [smem:[#allocation89_spill]] %s2955_s4 }
   0x6   :  { %9 = vsyncpa [#allocation7], 0 }
   0x7   :  { %10 = vsyncpa [#allocation5], 0 }
   0x8   :  { %12 = vsyncpa [#allocation5 + $0x1], 0 }
   0x9   :  { %13 = vsyncpa [#allocation6], 0 }
   0xa   :  { %15 = vsyncpa [#allocation6 + $0x1], 0  ;;  %s1877_s15 = smov 0   ;;  %s1879_s16 = smov 0  }
   0xb   :  { %s1881_s17 = smov 0   ;;  %s1883_s18 = smov 0  }
   0xc   :  { %s1885_s19 = smov 0   ;;  %s1887_s20 = smov 0  }
   0xd LB: > { %3044 = sst [smem:[#allocation13_spill]] %s1814_s15  ;;  %s1497_s21 = sadd.s32 4294967295, %s1834_s20   ;;  %s1834_s20 = sphi %s1887_s20, %s21_s20   ;;  %s1830_s19 = sphi %s1885_s19, %s3288_s19   ;;  %s1826_s18 = sphi %s1883_s18, %s3287_s18   ;;  %s1822_s17 = sphi %s1881_s17, %s3286_s17   ;;  %s1818_s16 = sphi %s1879_s16, %s3285_s16   ;;  %s1814_s15 = sphi %s1877_s15, %s3284_s15  }
   0xe   : > { %3045 = sst [smem:[#allocation14_spill]] %s1818_s16  ;;  %s1498_s22 = sadd.s32 4294967294, %s1834_s20  }
   0xf   : > { %3046 = sst [smem:[#allocation15_spill]] %s1822_s17  ;;  %p118_p0 = scmp.ne.s32.totalorder %s1818_s16, %s1814_s15 }
  0x10   : > { %3047 = sst [smem:[#allocation16_spill]] %s1826_s18  ;;  %p1911_p1 = scmp.eq.s32.totalorder %s1497_s21, 0 }
  0x11   : > { %3048 = sst [smem:[#allocation17_spill]] %s1830_s19  ;;  %p1915_p2 = scmp.eq.s32.totalorder %s1497_s21, 1 }
  0x12   : > { %3049 = sst [smem:[#allocation18_spill]] %s1834_s20  ;;  %p148_p3 = scmp.eq.s32.totalorder %s1498_s22, 1 }
  0x13   : > { %s3050_s23 = scalar_select %p1911_p1, 1, 0 }
  0x14   : > { %p1921_p4 = por %p1911_p1, %p118_p0  ;;  %p1499_p5 = scmp.ge.s32.totalorder %s1834_s20, 1 }
  0x15   : > { %p1926_p6 = por %p148_p3, %p118_p0  ;;  %p155_p7 = scmp.lt.s32.totalorder %s1834_s20, 3 }
  0x16   : > { %s3052_s25 = scalar_select %p1921_p4, 1, 0 }
  0x17   : > { %s3053_s26 = scalar_select %p1926_p6, 1, 0 }
  0x18   : > { %p1931_p8 = pnand %p1499_p5, %p155_p7  ;;  %s33_s28 = sadd.s32 1, %s1830_s19 }
  0x19   : > { %3054 = sst [smem:[#allocation19_spill]] %s3053_s26  ;;  %p1945_p12 = scmp.ge.s32.totalorder %s33_s28, 2 }
  0x1a   : > { %p1622_p10 = pneg %p1931_p8  ;;  %s105_s5 = sadd.s32 1, %s1822_s17 }
  0x1b   : > { %p112_p13 = scmp.ne.s32.totalorder %s1822_s17, %s1818_s16  ;;  %p113_p0 = scmp.eq.s32.totalorder %s1834_s20, 0 }
  0x1c   : > { %p1941_p11 = pnand %p1622_p10, %p1911_p1  ;;  %s3058_s0 = sld [smem:[#allocation85_spill]] }
  0x1e   : > { %p1707_p5 = pneg %p1941_p11 }
  0x22   : > { %s1705_s8 = scalar_lea.hbm %s3058_s0, 16 }
  0x23   : > { %p1706_p3 = scmp.ne.s32.totalorder %s3058_s0, %s1705_s8  ;;  %p1712_p9 = scmp.lt.u32.totalorder %s1705_s8, %s3058_s0 }
  0x25   : > { %p1708_p7 = pnand %p1707_p5, %p1706_p3 }
  0x27   : > { %p1709_p10 = pneg %p1708_p7 }
  0x29   : > { %p1714_p6 = pnand %p1712_p9, %p1709_p10 }
  0x2b   : > { %1717 = shalt.err (!%p1714_p6)
}
  0x2c   : > { %s1836_s13 = smov [#allocation4]   ;;  %s3290_s28 = smov (%p1945_p12, %s33_s28), 0 }
  0x2d   : > { %1625 = dma.hbm_to_smem (!%p1941_p11), %s3058_s0, 16, %s1836_s13, [#allocation7]  }
  0x2e   : > { %3059 = sst [smem:[#allocation20_spill]] %s3290_s28  ;;  %p1976_p6 = por %p113_p0, %p112_p13 }
  0x2f   : > { %p1985_p9 = por %p1915_p2, %p112_p13  ;;  %s100_s6 = ssub.s32 %s1830_s19, %s3290_s28 }
  0x30   : > { %p1635_p3 = scmp.lt.s32.totalorder %s1834_s20, 2  ;;  %p103_p5 = scmp.eq.s32.totalorder %s100_s6, 0 }
  0x31   : > { %s3061_s29 = scalar_select %p1985_p9, 1, 0 }
  0x32   : > { %s183_s7 = sand.u32 1, %s1822_s17   ;;  %s1612_s9 = sshll.u32 %s1830_s19, 7 }
  0x33   : > { %3062 = sst [smem:[#allocation21_spill]] %s3061_s29  ;;  %s1502_s30 = sshll.u32 %s183_s7, 3 }
  0x34   : > { %s1994_s8 = scalar_select %p103_p5, %s1822_s17, %s105_s5  }
  0x35   : > { %s3064_s3 = sld [smem:[#allocation88_spill]]  ;;  %s187_s24 = scalar_lea.vmem [#allocation8], %s1502_s30 }
  0x36   : > { %3063 = sst [smem:[#allocation22_spill]] %s1994_s8  ;;  %s197_s13 = sshll.u32 %s187_s24, 4  ;;  %s2002_s13 = int_to_ptr.vmem [resolvable:$true] %s197_s13 }
  0x37   : > { %p2006_p2 = pnand %p1635_p3, %p1976_p6  ;;  %s184_s5 = scalar_lea.sflag [#allocation5], %s183_s7 }
  0x39   : > { %p1720_p12 = pneg %p2006_p2 }
  0x3b   : > { %s2000_s12 = scalar_lea.hbm %s3064_s3, %s1612_s9  ;;  %s1723_s9 = scalar_lea.hbm %s3064_s3, 256 }
  0x3c   : > { %s1718_s21 = scalar_lea.hbm %s2000_s12, 128  ;;  %p1724_p7 = scmp.lt.u32.totalorder %s2000_s12, %s3064_s3 }
  0x3d   : > { %p1719_p11 = scmp.ne.s32.totalorder %s2000_s12, %s1718_s21  ;;  %p1725_p10 = scmp.lt.u32.totalorder %s1723_s9, %s1718_s21 }
  0x3e   : > { %p1727_p3 = scmp.lt.u32.totalorder %s1718_s21, %s2000_s12 }
  0x3f   : > { %p1721_p13 = pnand %p1720_p12, %p1719_p11  ;;  %p1726_p6 = por %p1725_p10, %p1724_p7 }
  0x41   : > { %p1722_p0 = pneg %p1721_p13  ;;  %p1728_p5 = por %p1727_p3, %p1726_p6 }
  0x43   : > { %p1729_p9 = pnand %p1728_p5, %p1722_p0 }
  0x45   : > { %1732 = shalt.err (!%p1729_p9)
}
  0x46   : > { %s1733_s7 = scalar_lea.vmem %s2002_s13, 128  ;;  %s1837_s11 = smov [#allocation8]  }
  0x47   : > { %p1734_p11 = scmp.ne.s32.totalorder %s2002_s13, %s1733_s7  ;;  %s1738_s24 = sshll.u32 %s1837_s11, 4  ;;  %s1739_s24 = int_to_ptr.vmem [resolvable:$false] %s1738_s24 }
  0x48   : > { %s1740_s6 = scalar_lea.vmem %s1739_s24, 256  ;;  %p1741_p1 = scmp.lt.s32.totalorder %s2002_s13, %s1739_s24 }
  0x49   : > { %p1736_p13 = pnand %p1734_p11, %p1720_p12  ;;  %p1742_p7 = scmp.lt.s32.totalorder %s1740_s6, %s1733_s7 }
  0x4b   : > { %p1737_p4 = pneg %p1736_p13  ;;  %p1743_p10 = por %p1742_p7, %p1741_p1 }
  0x4d   : > { %p1744_p6 = pnand %p1743_p10, %p1737_p4 }
  0x4f   : > { %1747 = shalt.err (!%p1744_p6)
}
  0x50   : > { %1629 = dma.hbm_to_vmem [thread:$0]  (!%p2006_p2), %s2000_s12, 128, %s2002_s13, %s184_s5  }
  0x51   : > { %206 = sbr.rel (%p1931_p8) target bundleno = 499 (0x1f3), region = 36 }
  0x58   : > { %p3066_p9 = scmp.ne.s32.totalorder %s3050_s23, 0 }
  0x5a   : > { %1801 = dma.done.wait (%p3066_p9), [#allocation7], 16  }
  0x5b   : > { %1803 = vsyncadd (%p3066_p9), [#allocation7], 4294967280  ;;  %s2042_s21 = sand.u32 1, %s1818_s16   ;;  %p3068_p1 = scmp.ne.s32.totalorder %s3052_s25, 0 }
  0x5c   : > { %3067 = sst [smem:[#allocation23_spill]] %s2042_s21  ;;  %s1507_s30 = sshll.u32 %s2042_s21, 3 }
  0x5d   : > { %s213_s14 = scalar_lea.sflag [#allocation5], %s2042_s21  ;;  %s216_s9 = scalar_lea.vmem [#allocation8], %s1507_s30 }
  0x5e   : > { %1805 = dma.done.wait (%p3068_p1), %s213_s14, 128  }
  0x5f   : > { %1807 = vsyncadd (%p3068_p1), %s213_s14, 4294967168 }
  0x60   : > { %221 = sfence }
  0x61   : > { %v242_v0 = vld [vmem:[%s216_s9] sm:$0xff]  ;;  %vm246_vm0 = vcmask 1043456   ;;  %v1838_v9 = vmov 1966171168   ;;  %v285_v11 = vlaneseq  ;;  %s1839_s23 = smov 3   ;;  %s1840_s25 = smov 2  }
  0x62   : > { %v244_v1 = vcombine.high %v242_v0, %v242_v0  ;;  %v261_v2 = vsel %vm246_vm0, %v242_v0, -inf  ;;  %v247_v5 = vsel %vm246_vm0, %v242_v0, 0.0  ;;  %v283_v10 = vunpack.c.l.s4 %v1838_v9  ;;  %s3071_s2 = sld [smem:[#allocation87_spill]]  ;;  %s1550_s13 = sld [smem:[#allocation4 + $0x3]] }
  0x63   : > { %v262_v3 = vrot.slane %v261_v2, 4  ;;  %v248_v8 = vrot.slane %v247_v5, 4  ;;  %v286_v22 = vshrl.u32 %v285_v11, 7  ;;  %vm2055_vm1 = vcmp.lt.s32.totalorder %v285_v11, 256  ;;  %s1551_s5 = sld [smem:[#allocation4 + $0x34]]  ;;  %s1552_s22 = sld [smem:[#allocation4 + $0xa]] }
  0x64   : > { %v268_v4 = vsel %vm246_vm0, %v244_v1, -inf  ;;  %v254_v12 = vsel %vm246_vm0, %v244_v1, 0.0  ;;  %v284_v21 = vunpack.c.0.s8 %v283_v10  ;;  %s1553_s10 = sld [smem:[#allocation4 + $0x3b]]  ;;  %s1841_s7 = smov 1  }
  0x65   : > { %v263_v6 = vmax.f32 %v261_v2, %v262_v3  ;;  %v269_v7 = vrot.slane %v268_v4, 4  ;;  %v249_v15 = vadd.f32 %v248_v8, %v247_v5  ;;  %v255_v16 = vrot.slane %v254_v12, 4  ;;  %s1554_s11 = sld [smem:[#allocation4 + $0x11]]  ;;  %s1555_s24 = sld [smem:[#allocation4 + $0x42]] }
  0x66   : > { %v2051_v32 = vsub.s32 %v284_v21, %v286_v22  ;;  %v2066_v43 = vsub.s32 0, %v286_v22  ;;  %v2068_v44 = vsub.s32 1, %v286_v22  ;;  %s1558_s6 = sld [smem:[#allocation4 + $0x1f]]  ;;  %s1559_s30 = sld [smem:[#allocation4 + $0x50]] }
  0x67   : > { %v264_v13 = vrot.slane %v263_v6, 2  ;;  %v270_v14 = vmax.f32 %v268_v4, %v269_v7  ;;  %v250_v19 = vrot.slane %v249_v15, 2  ;;  %v256_v20 = vadd.f32 %v255_v16, %v254_v12  ;;  %s1842_s14 = smov 127   ;;  %s1843_s9 = smov 126  }
  0x68   : > { %v2086_v51 = vld [vmem:[%s3071_s2] sm:$0x3]  ;;  %v774_v54 = vstv %s1550_s13  ;;  %s1844_s27 = smov 125   ;;  %s1562_s12 = sld [smem:[#allocation4 + $0x2d]] }
  0x69   : > { %v265_v17 = vmax.f32 %v263_v6, %v264_v13  ;;  %v271_v18 = vrot.slane %v270_v14, 2  ;;  %v251_v25 = vadd.f32 %v250_v19, %v249_v15  ;;  %v257_v26 = vrot.slane %v256_v20, 2  ;;  %s1563_s13 = sld [smem:[#allocation4 + $0x5e]]  ;;  %s2149_s0 = sld [smem:[#allocation4 + $0x32]] }
  0x6a   : > { %vm390_vm2 = vcmp.ge.s32.totalorder %v2086_v51, 0  ;;  %vm391_vm3 = vcmp.lt.s32.totalorder %v2086_v51, 16  ;;  %v776_v55 = vstv %s1551_s5  ;;  %v782_v58 = vstv %s1552_s22  ;;  %s1556_s5 = sld [smem:[#allocation4 + $0x18]]  ;;  %s1557_s22 = sld [smem:[#allocation4 + $0x49]] }
  0x6b   : > { %v266_v23 = vrot.slane %v265_v17, 1  ;;  %v272_v24 = vmax.f32 %v270_v14, %v271_v18  ;;  %v252_v29 = vrot.slane %v251_v25, 1  ;;  %v258_v30 = vadd.f32 %v257_v26, %v256_v20  ;;  %vm392_vm4 = vmand %vm390_vm2, %vm391_vm3  ;;  %s2151_s2 = sld [smem:[#allocation4 + $0x39]]  ;;  %s2153_s3 = sld [smem:[#allocation4 + $0x40]] }
  0x6c   : > { %v784_v59 = vstv %s1553_s10  ;;  %v790_v63 = vstv %s1554_s11  ;;  %v792_v0 = vstv %s1555_s24  ;;  %v806_v4 = vstv %s1558_s6  ;;  %s2119_s10 = sld [smem:[#allocation4 + $0x46]]  ;;  %s2123_s11 = sld [smem:[#allocation4]] }
  0x6d   : > { %v267_v27 = vmax.f32 %v265_v17, %v266_v23  ;;  %v273_v28 = vrot.slane %v272_v24, 1  ;;  %v253_v33 = vadd.f32 %v252_v29, %v251_v25  ;;  %v259_v34 = vrot.slane %v258_v30, 1  ;;  %s2125_s24 = sld [smem:[#allocation4 + $0x31]]  ;;  %s2127_s6 = sld [smem:[#allocation4 + $0x7]] }
  0x6e   : > { %v808_v7 = vstv %s1559_s30  ;;  %v822_v16 = vstv %s1562_s12  ;;  %s2129_s30 = sld [smem:[#allocation4 + $0x38]]  ;;  %s2141_s12 = sld [smem:[#allocation4 + $0xf]]  ;;  %v2198_v26 = vand.u32 127, %v285_v11  ;;  %v2214_v11 = vadd.s32 4294967294, %v2086_v51 }
  0x6f   : > { %v274_v31 = vmax.f32 %v272_v24, %v273_v28  ;;  %v260_v36 = vadd.f32 %v259_v34, %v258_v30  ;;  %v824_v17 = vstv %s1563_s13  ;;  %s2143_s13 = sld [smem:[#allocation4 + $0x1c]]  ;;  %3087 = sst [smem:[#allocation39_spill]] %s2149_s0 }
  0x70   : > { %v798_v20 = vstv %s1556_s5  ;;  %v800_v21 = vstv %s1557_s22  ;;  %s2145_s5 = sld [smem:[#allocation4 + $0x47]]  ;;  %s2147_s22 = sld [smem:[#allocation4 + $0x4d]]  ;;  %vm449_vm5 = vcmp.lt.s32.totalorder %v2198_v26, 3  ;;  %vm560_vm8 = vcmp.lt.s32.totalorder %v2198_v26, 2 }
  0x71   : > { %v304_v35 = vcombine.low %v267_v27, %v274_v31  ;;  %v281_v38 = vcombine.low %v253_v33, %v260_v36  ;;  %3088 = sst [smem:[#allocation40_spill]] %s2151_s2  ;;  %s2155_s28 = sld [smem:[#allocation4 + $0x1d]]  ;;  %v2205_v27 = vadd.s32 4294967293, %v2086_v51  ;;  %vm383_vm9 = vcmp.ge.s32.totalorder %v2214_v11, 0 }
  0x72   : > { %3072 = sst [smem:[#allocation24_spill]] %s2119_s10  ;;  %s2159_s8 = sld [smem:[#allocation4 + $0x54]]  ;;  %v532_v28 = vstv %s2119_s10  ;;  %v509_v30 = vstv %s2123_s11  ;;  %vm384_vm10 = vcmp.lt.s32.totalorder %v2214_v11, 16  ;;  %vm667_vm11 = vcmp.lt.s32.totalorder %v2198_v26, 1 }
  0x73   : > { %v311_v37 = vrot.slane %v304_v35, %v2051_v32  ;;  %v288_v41 = vrot.slane %v281_v38, %v2051_v32  ;;  %3074 = sst [smem:[#allocation26_spill]] %s2123_s11  ;;  %s2157_s19 = sld [smem:[#allocation4 + $0x23]]  ;;  %v511_v31 = vstv %s2125_s24  ;;  %v516_v33 = vstv %s2127_s6  ;;  %vm2439_vm0 = vmand %vm383_vm9, %vm384_vm10 }
  0x74   : > { %3075 = sst [smem:[#allocation27_spill]] %s2125_s24  ;;  %s2161_s17 = sld [smem:[#allocation4 + $0x17]]  ;;  %v518_v35 = vstv %s2129_s30  ;;  %vm379_vm6 = vcmp.ge.s32.totalorder %v2205_v27, 0  ;;  %vm380_vm7 = vcmp.lt.s32.totalorder %v2205_v27, 16  ;;  %vm832_vm15 = vcmp.lt.s32.totalorder %v2198_v26, 127 }
  0x75   : > { %v318_v40 = vrot.slane %v311_v37, %v2051_v32  ;;  %v295_v42 = vrot.slane %v288_v41, %v2051_v32  ;;  %3076 = sst [smem:[#allocation28_spill]] %s2127_s6  ;;  %s2163_s16 = sld [smem:[#allocation4 + $0x2]]  ;;  %v625_v41 = vstv %s2141_s12  ;;  %vm2372_vm12 = vmand %vm379_vm6, %vm380_vm7  ;;  %vm1046_vm6 = vcmp.lt.s32.totalorder %v2198_v26, 125 }
  0x76   : > { %3077 = sst [smem:[#allocation29_spill]] %s2129_s30  ;;  %s2165_s20 = sld [smem:[#allocation4 + $0x9]] }
  0x77   : > { %320 = vst.msk [vmem:[#allocation3] sm:$0x3] %vm2055_vm1, %v318_v40  ;;  %301 = vst.msk [vmem:[#allocation2] sm:$0x3] %vm2055_vm1, %v295_v42  ;;  %3083 = sst [smem:[#allocation35_spill]] %s2141_s12  ;;  %s2169_s15 = sld [smem:[#allocation4 + $0x10]]  ;;  %v537_v42 = vstv %s2143_s13 }
  0x78   : > { %3084 = sst [smem:[#allocation36_spill]] %s2143_s13  ;;  %s2167_s26 = sld [smem:[#allocation4 + $0x4e]] }
  0x79   : > { %3085 = sst [smem:[#allocation37_spill]] %s2145_s5  ;;  %s2171_s4 = sld [smem:[#allocation4 + $0x24]] }
  0x7a   : > { %3086 = sst [smem:[#allocation38_spill]] %s2147_s22  ;;  %s2173_s29 = sld [smem:[#allocation4 + $0x48]] }
  0x7b   : > { %3089 = sst [smem:[#allocation41_spill]] %s2153_s3  ;;  %s2175_s18 = sld [smem:[#allocation4 + $0x33]] }
  0x7c   : > { %3090 = sst [smem:[#allocation42_spill]] %s2155_s28  ;;  %s2177_s21 = sld [smem:[#allocation4 + $0x3a]] }
  0x7d   : > { %3091 = sst [smem:[#allocation43_spill]] %s2157_s19  ;;  %s2179_s1 = sld [smem:[#allocation4 + $0x55]] }
  0x7e   : > { %v375_v45 = vld [vmem:[#allocation3] sm:$0x3]  ;;  %v374_v47 = vld [vmem:[#allocation2] sm:$0x3]  ;;  %3092 = sst [smem:[#allocation44_spill]] %s2159_s8  ;;  %s2181_s8 = sld [smem:[#allocation4 + $0x41]] }
  0x7f   : > { %v2071_v46 = vrot.slane %v375_v45, %v2066_v43  ;;  %v2075_v48 = vrot.slane %v374_v47, %v2066_v43  ;;  %v2078_v49 = vrot.slane %v375_v45, %v2068_v44  ;;  %v440_v50 = vrot.slane %v374_v47, %v2068_v44  ;;  %3093 = sst [smem:[#allocation45_spill]] %s2161_s17  ;;  %s2227_s10 = sld [smem:[#allocation4 + $0xc]] }
  0x80   : > { %v771_v52 = vsel %vm392_vm4, %v375_v45, 0.0  ;;  %v770_v53 = vsel %vm392_vm4, %v374_v47, 0.0  ;;  %3094 = sst [smem:[#allocation46_spill]] %s2163_s16  ;;  %s2183_s16 = sld [smem:[#allocation4 + $0x1e]]  ;;  %v635_v45 = vstv %s2145_s5  ;;  %v611_v47 = vstv %s2149_s0 }
  0x81   : > { %463 = vrot.lane.b32.xlu1 %v2071_v46, %s1839_s23  ;;  %443 = vrot.lane.b32.xlu0 %v2075_v48, %s1839_s23  ;;  %v775_v56 = vmul.f32 %v774_v54, %v770_v53  ;;  %v777_v57 = vmul.f32 %v776_v55, %v771_v52  ;;  %v783_v61 = vmul.f32 %v782_v58, %v770_v53  ;;  %3095 = sst [smem:[#allocation47_spill]] %s2165_s20  ;;  %s2236_s6 = sld [smem:[#allocation4 + $0x51]]  ;;  %v740_v54 = vstv %s2161_s17 }
  0x82   : > { %v785_v62 = vmul.f32 %v784_v59, %v771_v52  ;;  %v791_v2 = vmul.f32 %v790_v63, %v770_v53  ;;  %v793_v3 = vmul.f32 %v792_v0, %v771_v52  ;;  %v807_v5 = vmul.f32 %v806_v4, %v770_v53  ;;  %3096 = sst [smem:[#allocation48_spill]] %s2167_s26  ;;  %s2185_s26 = sld [smem:[#allocation4 + $0x19]] }
  0x83   : > { %v2096_v60 = vadd.f32 %v777_v57, %v775_v56  ;;  %v809_v8 = vmul.f32 %v808_v7, %v771_v52  ;;  %v823_v18 = vmul.f32 %v822_v16, %v770_v53  ;;  %v825_v19 = vmul.f32 %v824_v17, %v771_v52  ;;  %3097 = sst [smem:[#allocation49_spill]] %s2169_s15  ;;  %s2238_s30 = sld [smem:[#allocation4 + $0x25]] }
  0x84   : > { %v2098_v1 = vadd.f32 %v785_v62, %v783_v61  ;;  %v2101_v6 = vadd.f32 %v793_v3, %v791_v2  ;;  %v799_v23 = vmul.f32 %v798_v20, %v770_v53  ;;  %v801_v24 = vmul.f32 %v800_v21, %v771_v52  ;;  %3098 = sst [smem:[#allocation50_spill]] %s2171_s4  ;;  %s2187_s15 = sld [smem:[#allocation4 + $0x4]] }
  0x85   : > { %465 = vrot.lane.b32.xlu1 %v2078_v49, %s1839_s23  ;;  %445 = vrot.lane.b32.xlu0 %v440_v50, %s1839_s23  ;;  %v2105_v9 = vadd.f32 %v809_v8, %v807_v5  ;;  %s1560_s23 = sld [smem:[#allocation4 + $0x26]]  ;;  %v2115_v22 = vadd.f32 %v825_v19, %v823_v18  ;;  %3100 = sst [smem:[#allocation52_spill]] %s2175_s18  ;;  %v2277_v63 = vadd.s32 1, %v2086_v51  ;;  %v2322_v7 = vadd.s32 3, %v2086_v51 }
  0x86   : > { %v2117_v25 = vadd.f32 %v801_v24, %v799_v23  ;;  %3099 = sst [smem:[#allocation51_spill]] %s2173_s29  ;;  %s2189_s4 = sld [smem:[#allocation4 + $0xb]]  ;;  %vm939_vm4 = vcmp.lt.s32.totalorder %v2198_v26, 126 }
  0x87   : > { %3101 = sst [smem:[#allocation53_spill]] %s2177_s21  ;;  %s2191_s29 = sld [smem:[#allocation4 + $0x12]]  ;;  %vm394_vm2 = vcmp.ge.s32.totalorder %v2277_v63, 0  ;;  %vm395_vm3 = vcmp.lt.s32.totalorder %v2277_v63, 16  ;;  %vm402_vm10 = vcmp.ge.s32.totalorder %v2322_v7, 0 }
  0x88   : > { %3102 = sst [smem:[#allocation54_spill]] %s2179_s1  ;;  %s2193_s18 = sld [smem:[#allocation4 + $0x4a]]  ;;  %vm2612_vm9 = vmand %vm394_vm2, %vm395_vm3 }
  0x89   : > { %558 = vrot.lane.b32.xlu1 %v440_v50, %s1840_s25  ;;  %556 = vrot.lane.b32.xlu0 %v2075_v48, %s1840_s25  ;;  %3103 = sst [smem:[#allocation55_spill]] %s2181_s8  ;;  %s2195_s21 = sld [smem:[#allocation4 + $0x4f]] }
  0x8a   : > { %3104 = sst [smem:[#allocation56_spill]] %s2183_s16  ;;  %s2200_s16 = sld [smem:[#allocation4 + $0x35]] }
  0x8b   : > { %v814_v10 = vstv %s1560_s23  ;;  %s2135_s23 = sld [smem:[#allocation4 + $0x3f]]  ;;  %3105 = sst [smem:[#allocation57_spill]] %s2185_s26 }
  0x8c   : > { %v815_v12 = vmul.f32 %v814_v10, %v770_v53  ;;  %3106 = sst [smem:[#allocation58_spill]] %s2187_s15  ;;  %s2202_s8 = sld [smem:[#allocation4 + $0x3c]]  ;;  %v544_v53 = vstv %s2157_s19 }
  0x8d   : > { %565 = vrot.lane.b32.xlu1 %v2078_v49, %s1840_s25  ;;  %563 = vrot.lane.b32.xlu0 %v2071_v46, %s1840_s25  ;;  %s1561_s25 = sld [smem:[#allocation4 + $0x57]]  ;;  %3107 = sst [smem:[#allocation59_spill]] %s2189_s4 }
  0x8e   : > { %3108 = sst [smem:[#allocation60_spill]] %s2191_s29  ;;  %s2209_s29 = sld [smem:[#allocation4 + $0x43]] }
  0x8f   : > { %3109 = sst [smem:[#allocation61_spill]] %s2193_s18  ;;  %s2251_s13 = sld [smem:[#allocation4 + $0x3d]] }
  0x90   : > { %3110 = sst [smem:[#allocation62_spill]] %s2195_s21  ;;  %s2211_s21 = sld [smem:[#allocation4 + $0x2a]] }
  0x91   : > { %665 = vrot.lane.b32.xlu1 %v440_v50, %s1841_s7  ;;  %663 = vrot.lane.b32.xlu0 %v2075_v48, %s1841_s7  ;;  %3080 = sst [smem:[#allocation32_spill]] %s2135_s23  ;;  %v525_v37 = vstv %s2135_s23  ;;  %s3119_s23 = sld [smem:[#allocation44_spill]] }
  0x92   : > { %3111 = sst [smem:[#allocation63_spill]] %s2200_s16  ;;  %s2221_s16 = sld [smem:[#allocation4 + $0x5b]] }
  0x93   : > { %v816_v13 = vstv %s1561_s25  ;;  %s2137_s25 = sld [smem:[#allocation4 + $0x1]]  ;;  %3112 = sst [smem:[#allocation64_spill]] %s2202_s8 }
  0x94   : > { %v817_v14 = vmul.f32 %v816_v13, %v771_v52  ;;  %3113 = sst [smem:[#allocation65_spill]] %s2209_s29  ;;  %s2219_s8 = sld [smem:[#allocation4 + $0x20]]  ;;  %v641_v52 = vstv %s2155_s28  ;;  %v2297_v13 = vadd.s32 2, %v2086_v51 }
  0x95   : > { %672 = vrot.lane.b32.xlu1 %v2078_v49, %s1841_s7  ;;  %670 = vrot.lane.b32.xlu0 %v2071_v46, %s1841_s7  ;;  %s2121_s7 = sld [smem:[#allocation4 + $0x15]]  ;;  %3116 = sst [smem:[#allocation68_spill]] %s2227_s10 }
  0x96   : > { %v2113_v15 = vadd.f32 %v817_v14, %v815_v12  ;;  %3118 = sst [smem:[#allocation69_spill]] %s2238_s30  ;;  %s3125_s11 = sld [smem:[#allocation48_spill]]  ;;  %v551_v12 = vstv %s2211_s21  ;;  %vm398_vm7 = vcmp.ge.s32.totalorder %v2297_v13, 0 }
  0x97   : > { %3124 = sst [smem:[#allocation71_spill]] %s2251_s13  ;;  %s3126_s24 = sld [smem:[#allocation50_spill]]  ;;  %v546_v57 = vstv %s3119_s23 }
  0x98   : > { %s2256_s5 = sld [smem:[#allocation4 + $0x56]]  ;;  %s3128_s30 = sld [smem:[#allocation52_spill]]  ;;  %v553_v16 = vstv %s2221_s16 }
  0x99   : > { %830 = vrot.lane.b32.xlu1 %v440_v50, %s1842_s14  ;;  %828 = vrot.lane.b32.xlu0 %v2075_v48, %s1842_s14  ;;  %3081 = sst [smem:[#allocation33_spill]] %s2137_s25  ;;  %v609_v38 = vstv %s2137_s25  ;;  %s2247_s25 = sld [smem:[#allocation4 + $0x13]] }
  0x9a   : > { %3114 = sst [smem:[#allocation66_spill]] %s2219_s8  ;;  %s3129_s0 = sld [smem:[#allocation53_spill]] }
  0x9b   : > { %3073 = sst [smem:[#allocation25_spill]] %s2121_s7  ;;  %v530_v29 = vstv %s2121_s7  ;;  %s2224_s7 = sld [smem:[#allocation4 + $0x5]] }
  0x9c   : > { %v643_v61 = vstv %s3125_s11  ;;  %s2280_s28 = sld [smem:[#allocation4 + $0x37]]  ;;  %s3138_s19 = sld [smem:[#allocation63_spill]] }
  0x9d   : > { %837 = vrot.lane.b32.xlu1 %v2078_v49, %s1842_s14  ;;  %835 = vrot.lane.b32.xlu0 %v2071_v46, %s1842_s14  ;;  %s2131_s14 = sld [smem:[#allocation4 + $0xe]]  ;;  %v649_v62 = vstv %s3126_s24  ;;  %s3139_s12 = sld [smem:[#allocation64_spill]] }
  0x9e   : > { %3127 = sst [smem:[#allocation72_spill]] %s2256_s5  ;;  %v718_v0 = vstv %s3128_s30  ;;  %s3140_s11 = sld [smem:[#allocation62_spill]] }
  0x9f   : > { %3121 = sst [smem:[#allocation70_spill]] %s2247_s25  ;;  %s2289_s24 = sld [smem:[#allocation4 + $0x3e]] }
  0xa0   : > { %v726_v2 = vstv %s3129_s0  ;;  %s2292_s30 = sld [smem:[#allocation4 + $0x14]]  ;;  %s2301_s1 = sld [smem:[#allocation4 + $0x22]] }
  0xa1   : > { %937 = vrot.lane.b32.xlu1 %v440_v50, %s1843_s9  ;;  %935 = vrot.lane.b32.xlu0 %v2075_v48, %s1843_s9  ;;  %3115 = sst [smem:[#allocation67_spill]] %s2224_s7  ;;  %s2303_s15 = sld [smem:[#allocation4 + $0x27]] }
  0xa2   : > { %3136 = sst [smem:[#allocation75_spill]] %s2280_s28  ;;  %s2308_s17 = sld [smem:[#allocation4 + $0x45]] }
  0xa3   : > { %3078 = sst [smem:[#allocation30_spill]] %s2131_s14  ;;  %v523_v36 = vstv %s2131_s14  ;;  %s2245_s14 = sld [smem:[#allocation4 + $0x36]] }
  0xa4   : > { %s2311_s18 = sld [smem:[#allocation4 + $0x2b]]  ;;  %s2317_s4 = sld [smem:[#allocation4 + $0x58]] }
  0xa5   : > { %944 = vrot.lane.b32.xlu1 %v2078_v49, %s1843_s9  ;;  %942 = vrot.lane.b32.xlu0 %v2071_v46, %s1843_s9  ;;  %s2133_s9 = sld [smem:[#allocation4 + $0x16]]  ;;  %s2315_s20 = sld [smem:[#allocation4 + $0x53]] }
  0xa6   : > { %3141 = sst [smem:[#allocation63_spill]] %s2292_s30  ;;  %s2327_s29 = sld [smem:[#allocation4 + $0x28]] }
  0xa7   : > { %3142 = sst [smem:[#allocation64_spill]] %s2301_s1  ;;  %s2329_s7 = sld [smem:[#allocation4 + $0x5c]] }
  0xa8   : > { %3143 = sst [smem:[#allocation62_spill]] %s2303_s15  ;;  %s2339_s10 = sld [smem:[#allocation4 + $0x2c]] }
  0xa9   : > { %1044 = vrot.lane.b32.xlu1 %v440_v50, %s1844_s27  ;;  %1042 = vrot.lane.b32.xlu0 %v2075_v48, %s1844_s27  ;;  %3120 = sst [smem:[#allocation44_spill]] %s2245_s14  ;;  %v539_v48 = vstv %s2147_s22  ;;  %v627_v50 = vstv %s2153_s3  ;;  %s2260_s14 = sld [smem:[#allocation4 + $0x6]] }
  0xaa   : > { %s2263_s22 = sld [smem:[#allocation4 + $0x21]]  ;;  %s2269_s3 = sld [smem:[#allocation4 + $0xd]] }
  0xab   : > { %3079 = sst [smem:[#allocation31_spill]] %s2133_s9  ;;  %v633_v34 = vstv %s2133_s9  ;;  %s3117_s9 = sld [smem:[#allocation46_spill]]  ;;  %v1129_v59 = vstv %s2315_s20 }
  0xac   : > { %s2337_s8 = sld [smem:[#allocation4 + $0x59]]  ;;  %s2358_s25 = sld [smem:[#allocation4 + $0x2e]] }
  0xad   : > { %1051 = vrot.lane.b32.xlu1 %v2078_v49, %s1844_s27  ;;  %1049 = vrot.lane.b32.xlu0 %v2071_v46, %s1844_s27  ;;  %s2139_s27 = sld [smem:[#allocation4 + $0x8]]  ;;  %v2242_v46 = vadd.s32 4294967295, %v2086_v51  ;;  %v619_v49 = vstv %s2151_s2  ;;  %s3133_s2 = sld [smem:[#allocation55_spill]] }
  0xae   : > { %3146 = sst [smem:[#allocation77_spill]] %s2339_s10  ;;  %s2346_s26 = sld [smem:[#allocation4 + $0x29]] }
  0xaf   : > { %3130 = sst [smem:[#allocation53_spill]] %s2260_s14  ;;  %s2356_s14 = sld [smem:[#allocation4 + $0x5a]]  ;;  %vm387_vm13 = vcmp.ge.s32.totalorder %v2242_v46, 0  ;;  %vm388_vm14 = vcmp.lt.s32.totalorder %v2242_v46, 16 }
  0xb0   : > { %3131 = sst [smem:[#allocation73_spill]] %s2263_s22  ;;  %s2364_s22 = sld [smem:[#allocation4 + $0x5f]] }
  0xb1   : > { %v716_v55 = vstv %s3117_s9  ;;  %3132 = sst [smem:[#allocation74_spill]] %s2269_s3  ;;  %s2272_s9 = sld [smem:[#allocation4 + $0x44]] }
  0xb2   : > { %3150 = sst [smem:[#allocation81_spill]] %s2358_s25  ;;  %s2366_s13 = sld [smem:[#allocation4 + $0x2f]] }
  0xb3   : > { %3082 = sst [smem:[#allocation34_spill]] %s2139_s27  ;;  %v617_v40 = vstv %s2139_s27  ;;  %s3122_s27 = sld [smem:[#allocation51_spill]]  ;;  %v734_v8 = vstv %s3133_s2 }
  0xb4   : > { %3147 = sst [smem:[#allocation78_spill]] %s2346_s26  ;;  %s2348_s2 = sld [smem:[#allocation4 + $0x5d]] }
  0xb5   : > { %3149 = sst [smem:[#allocation80_spill]] %s2356_s14  ;;  %s2380_s3 = sld [smem:[#allocation4 + $0x60]] }
  0xb6   : > { %3151 = sst [smem:[#allocation82_spill]] %s2364_s22  ;;  %s2382_s5 = sld [smem:[#allocation4 + $0x30]] }
  0xb7   : > { %s2388_s28 = sld [smem:[#allocation4 + $0x61]]  ;;  %s2390_s30 = sld [smem:[#allocation4 + $0x1a]] }
  0xb8   : > { %3152 = sst [smem:[#allocation83_spill]] %s2366_s13  ;;  %s2398_s15 = sld [smem:[#allocation4 + $0x4b]] }
  0xb9   : > { %v742_v58 = vstv %s3122_s27  ;;  %s2283_s27 = sld [smem:[#allocation4 + $0x52]]  ;;  %s3188_s14 = sld [smem:[#allocation54_spill]] }
  0xba   : > { %3148 = sst [smem:[#allocation79_spill]] %s2348_s2  ;;  %s3195_s0 = sld [smem:[#allocation56_spill]] }
  0xbb   : > { %3155 = sst [smem:[#allocation84_spill]] %s2380_s3  ;;  %s3187_s16 = sld [smem:[#allocation47_spill]] }
  0xbc   : > { %s3189_s3 = sld [smem:[#allocation49_spill]]  ;;  %s3197_s13 = sld [smem:[#allocation58_spill]] }
  0xbd   : > { %s3196_s25 = sld [smem:[#allocation57_spill]]  ;;  %s3202_s23 = sld [smem:[#allocation59_spill]] }
  0xbe   : > { %s3206_s22 = sld [smem:[#allocation65_spill]]  ;;  %s3213_s1 = sld [smem:[#allocation67_spill]] }
  0xbf   : > { %3137 = sst [smem:[#allocation76_spill]] %s2283_s27  ;;  %s3212_s27 = sld [smem:[#allocation71_spill]] }
  0xc0   : > { %s3214_s2 = sld [smem:[#allocation68_spill]]  ;;  %s3215_s26 = sld [smem:[#allocation70_spill]] }
  0xc1   : > { %s3218_s21 = sld [smem:[#allocation76_spill]]  ;;  %s3221_s10 = sld [smem:[#allocation73_spill]] }
  0xc2   : > { %s3249_s20 = sld [smem:[#allocation77_spill]] }
  0xf3   : > { %v464_v4 = vpop.permute.xlu1 %463  ;;  %v444_v17 = vpop.permute.xlu0 %443 }
  0xf7   : > { %v466_v14 = vpop.permute.xlu1 %465  ;;  %v446_v18 = vpop.permute.xlu0 %445 }
  0xf8   : > { %v467_v23 = vsel %vm449_vm5, %v464_v4, %v466_v14  ;;  %v468_v24 = vsel %vm449_vm5, %v466_v14, %v464_v4  ;;  %v450_v4 = vsel %vm449_vm5, %v444_v17, %v446_v18  ;;  %v451_v14 = vsel %vm449_vm5, %v446_v18, %v444_v17  ;;  %vm2514_vm5 = vmand %vm387_vm13, %vm388_vm14 }
  0xf9   : > { %v490_v20 = vcombine.low %v468_v24, %v467_v23  ;;  %v471_v21 = vcombine.low %v451_v14, %v450_v4  ;;  %vm1164_vm14 = vcmp.lt.s32.totalorder %v2198_v26, 48 }
  0xfb   : > { %v497_v19 = vrot.slane %v490_v20, %v2051_v32  ;;  %v559_v51 = vpop.permute.xlu1 %558  ;;  %v478_v5 = vrot.slane %v471_v21, %v2051_v32  ;;  %v557_v27 = vpop.permute.xlu0 %556  ;;  %v659_v20 = vstv %s2329_s7  ;;  %s3255_s7 = sld [smem:[#allocation82_spill]] }
  0xfc   : > { %v561_v14 = vsel %vm560_vm8, %v557_v27, %v559_v51 }
  0xfd   : > { %v504_v23 = vrot.slane %v497_v19, %v2051_v32  ;;  %v562_v19 = vsel %vm560_vm8, %v559_v51, %v557_v27  ;;  %v485_v24 = vrot.slane %v478_v5, %v2051_v32 }
  0xfe   : > { %v571_v10 = vcombine.low %v562_v19, %v561_v14 }
  0xff   : > { %v2402_v21 = vsel %vm2372_vm12, %v504_v23, 0.0  ;;  %v566_v18 = vpop.permute.xlu1 %565  ;;  %v2414_v3 = vsel %vm2372_vm12, %v485_v24, 0.0  ;;  %v564_v56 = vpop.permute.xlu0 %563 }
 0x100   : > { %v533_v51 = vmul.f32 %v532_v28, %v2402_v21  ;;  %v578_v23 = vrot.slane %v571_v10, %v2051_v32  ;;  %v531_v14 = vmul.f32 %v530_v29, %v2414_v3  ;;  %v567_v24 = vsel %vm560_vm8, %v564_v56, %v566_v18 }
 0x101   : > { %v568_v10 = vsel %vm560_vm8, %v566_v18, %v564_v56  ;;  %v510_v28 = vmul.f32 %v509_v30, %v2414_v3  ;;  %vm399_vm8 = vcmp.lt.s32.totalorder %v2297_v13, 16  ;;  %v3210_v13 = vstv %s3206_s22  ;;  %s3256_s22 = sld [smem:[#allocation78_spill]] }
 0x102   : > { %v585_v19 = vrot.slane %v578_v23, %v2051_v32  ;;  %v590_v4 = vcombine.low %v568_v10, %v567_v24  ;;  %v2433_v5 = vadd.f32 %v533_v51, %v531_v14  ;;  %v512_v23 = vmul.f32 %v511_v31, %v2402_v21  ;;  %vm400_vm12 = vmand %vm398_vm7, %vm399_vm8 }
 0x103   : > { %v666_v27 = vpop.permute.xlu1 %665  ;;  %v664_v29 = vpop.permute.xlu0 %663  ;;  %v1014_v24 = vstv %s2398_s15  ;;  %v519_v31 = vmul.f32 %v518_v35, %v2402_v21  ;;  %v540_v35 = vmul.f32 %v539_v48, %v2402_v21  ;;  %s1849_s15 = smov 96  }
 0x104   : > { %v597_v10 = vrot.slane %v590_v4, %v2051_v32  ;;  %v668_v11 = vsel %vm667_vm11, %v664_v29, %v666_v27  ;;  %v669_v18 = vsel %vm667_vm11, %v666_v27, %v664_v29  ;;  %v2460_v4 = vsel %vm2439_vm0, %v585_v19, 0.0 }
 0x105   : > { %v678_v51 = vcombine.low %v669_v18, %v668_v11  ;;  %v517_v27 = vmul.f32 %v516_v33, %v2414_v3  ;;  %v524_v29 = vmul.f32 %v523_v36, %v2414_v3  ;;  %v526_v19 = vmul.f32 %v525_v37, %v2402_v21 }
 0x106   : > { %v604_v17 = vrot.slane %v597_v10, %v2051_v32  ;;  %v538_v33 = vmul.f32 %v537_v42, %v2414_v3  ;;  %v634_v36 = vmul.f32 %v633_v34, %v2460_v4  ;;  %v2503_v34 = vadd.f32 %v512_v23, %v510_v28 }
 0x107   : > { %v673_v14 = vpop.permute.xlu1 %672  ;;  %v685_v18 = vrot.slane %v678_v51, %v2051_v32  ;;  %v671_v30 = vpop.permute.xlu0 %670  ;;  %v545_v28 = vmul.f32 %v544_v53, %v2414_v3  ;;  %v610_v46 = vmul.f32 %v609_v38, %v2460_v4  ;;  %v642_v38 = vmul.f32 %v641_v52, %v2460_v4 }
 0x108   : > { %v2480_v10 = vsel %vm2439_vm0, %v604_v17, 0.0  ;;  %v674_v17 = vsel %vm667_vm11, %v671_v30, %v673_v14  ;;  %v675_v56 = vsel %vm667_vm11, %v673_v14, %v671_v30  ;;  %v2518_v30 = vadd.f32 %v526_v19, %v524_v29 }
 0x109   : > { %v636_v37 = vmul.f32 %v635_v45, %v2480_v10  ;;  %v692_v51 = vrot.slane %v685_v18, %v2051_v32  ;;  %v697_v42 = vcombine.low %v675_v56, %v674_v17  ;;  %v547_v45 = vmul.f32 %v546_v57, %v2402_v21 }
 0x10a   : > { %v520_v18 = vadd.f32 %v519_v31, %v517_v27  ;;  %v626_v27 = vmul.f32 %v625_v41, %v2460_v4  ;;  %v2537_v29 = vadd.f32 %v540_v35, %v538_v33  ;;  %v612_v17 = vmul.f32 %v611_v47, %v2480_v10 }
 0x10b   : > { %v831_v48 = vpop.permute.xlu1 %830  ;;  %v2508_v14 = vadd.f32 %v636_v37, %v634_v36  ;;  %v704_v57 = vrot.slane %v697_v42, %v2051_v32  ;;  %v829_v23 = vpop.permute.xlu0 %828  ;;  %v618_v36 = vmul.f32 %v617_v40, %v2460_v4  ;;  %v2544_v40 = vsel %vm2514_vm5, %v692_v51, 0.0 }
 0x10c   : > { %v833_v31 = vsel %vm832_vm15, %v829_v23, %v831_v48  ;;  %v834_v53 = vsel %vm832_vm15, %v831_v48, %v829_v23  ;;  %v620_v33 = vmul.f32 %v619_v49, %v2480_v10  ;;  %v628_v35 = vmul.f32 %v627_v50, %v2480_v10 }
 0x10d   : > { %v711_v41 = vrot.slane %v704_v57, %v2051_v32  ;;  %v843_v19 = vcombine.low %v833_v31, %v834_v53  ;;  %v2556_v52 = vadd.f32 %v547_v45, %v545_v28  ;;  %v650_v56 = vmul.f32 %v649_v62, %v2460_v4 }
 0x10e   : > { %v2569_v49 = vmul.f32 %v551_v12, %v2414_v3  ;;  %v2574_v50 = vmul.f32 %v553_v16, %v2402_v21  ;;  %v741_v48 = vmul.f32 %v740_v54, %v2544_v40  ;;  %v613_v16 = vadd.f32 %v612_v17, %v610_v46 }
 0x10f   : > { %v838_v37 = vpop.permute.xlu1 %837  ;;  %v2563_v51 = vsel %vm2514_vm5, %v711_v41, 0.0  ;;  %v850_v42 = vrot.slane %v843_v19, %v2051_v32  ;;  %v836_v47 = vpop.permute.xlu0 %835  ;;  %v644_v54 = vmul.f32 %v643_v61, %v2480_v10  ;;  %v621_v28 = vadd.f32 %v620_v33, %v618_v36 }
 0x110   : > { %v743_v62 = vmul.f32 %v742_v58, %v2563_v51  ;;  %v839_v45 = vsel %vm832_vm15, %v836_v47, %v838_v37  ;;  %v840_v11 = vsel %vm832_vm15, %v838_v37, %v836_v47  ;;  %v719_v21 = vmul.f32 %v718_v0, %v2563_v51 }
 0x111   : > { %v862_v3 = vcombine.low %v839_v45, %v840_v11  ;;  %v727_v57 = vmul.f32 %v726_v2, %v2563_v51  ;;  %v629_v23 = vadd.f32 %v628_v35, %v626_v27  ;;  %v857_v46 = vrot.slane %v850_v42, %v2051_v32 }
 0x112   : > { %v2593_v58 = vadd.f32 %v743_v62, %v741_v48  ;;  %v717_v61 = vmul.f32 %v716_v55, %v2544_v40  ;;  %v735_v53 = vmul.f32 %v734_v8, %v2563_v51  ;;  %v3192_v41 = vstv %s3187_s16  ;;  %s3225_s16 = sld [smem:[#allocation53_spill]] }
 0x113   : > { %v938_v12 = vpop.permute.xlu1 %937  ;;  %v869_v0 = vrot.slane %v862_v3, %v2051_v32  ;;  %v936_v31 = vpop.permute.xlu0 %935  ;;  %v725_v55 = vmul.f32 %v3192_v41, %v2544_v40  ;;  %v3193_v19 = vstv %s3188_s14  ;;  %v3194_v35 = vstv %s3189_s3  ;;  %s3229_s14 = sld [smem:[#allocation75_spill]]  ;;  %s3231_s3 = sld [smem:[#allocation74_spill]] }
 0x114   : > { %v940_v2 = vsel %vm939_vm4, %v936_v31, %v938_v12  ;;  %v941_v27 = vsel %vm939_vm4, %v938_v12, %v936_v31  ;;  %v652_v8 = vmul.f32 %v3193_v19, %v2480_v10  ;;  %v720_v33 = vadd.f32 %v719_v21, %v717_v61 }
 0x115   : > { %v876_v37 = vrot.slane %v869_v0, %v2051_v32  ;;  %v950_v17 = vcombine.low %v940_v2, %v941_v27  ;;  %v733_v42 = vmul.f32 %v3194_v35, %v2544_v40  ;;  %vm403_vm11 = vcmp.lt.s32.totalorder %v2322_v7, 16 }
 0x116   : > { %v614_v47 = vadd.f32 %v613_v16, %v2503_v34  ;;  %v622_v48 = vadd.f32 %v621_v28, %v520_v18  ;;  %v728_v62 = vadd.f32 %v727_v57, %v725_v55  ;;  %v645_v45 = vadd.f32 %v644_v54, %v642_v38  ;;  %vm2704_vm13 = vmand %vm402_vm10, %vm403_vm11 }
 0x117   : > { %v945_v63 = vpop.permute.xlu1 %944  ;;  %v2635_v11 = vsel %vm2612_vm9, %v857_v46, 0.0  ;;  %v2639_v3 = vsel %vm2612_vm9, %v876_v37, 0.0  ;;  %v943_v12 = vpop.permute.xlu0 %942  ;;  %v630_v21 = vadd.f32 %v629_v23, %v2518_v30  ;;  %v736_v0 = vadd.f32 %v735_v53, %v733_v42 }
 0x118   : > { %v957_v34 = vrot.slane %v950_v17, %v2051_v32  ;;  %v946_v18 = vsel %vm939_vm4, %v943_v12, %v945_v63  ;;  %v947_v38 = vsel %vm939_vm4, %v945_v63, %v943_v12  ;;  %v3198_v16 = vstv %s3140_s11  ;;  %s3204_s11 = sld [smem:[#allocation60_spill]] }
 0x119   : > { %v751_v54 = vmul.f32 %v3198_v16, %v2563_v51  ;;  %v969_v28 = vcombine.low %v946_v18, %v947_v38  ;;  %v721_v46 = vadd.f32 %v720_v33, %v614_v47  ;;  %v3199_v31 = vstv %s3195_s0  ;;  %s3236_s0 = sld [smem:[#allocation63_spill]] }
 0x11a   : > { %v749_v30 = vmul.f32 %v3199_v31, %v2544_v40  ;;  %v653_v23 = vadd.f32 %v652_v8, %v650_v56  ;;  %v3200_v61 = vstv %s3196_s25  ;;  %v3201_v36 = vstv %s3138_s19  ;;  %s3208_s19 = sld [smem:[#allocation66_spill]]  ;;  %s3238_s25 = sld [smem:[#allocation64_spill]] }
 0x11b   : > { %v1045_v57 = vpop.permute.xlu1 %1044  ;;  %v2656_v53 = vmul.f32 %v3200_v61, %v2635_v11  ;;  %v884_v2 = vmul.f32 %v3201_v36, %v2639_v3  ;;  %v729_v27 = vadd.f32 %v728_v62, %v622_v48  ;;  %v646_v41 = vadd.f32 %v645_v45, %v2537_v29  ;;  %v1043_v19 = vpop.permute.xlu0 %1042 }
 0x11c   : > { %v976_v55 = vrot.slane %v969_v28, %v2051_v32  ;;  %v3203_v37 = vstv %s3197_s13  ;;  %v3205_v56 = vstv %s3139_s12  ;;  %v737_v63 = vadd.f32 %v736_v0, %v630_v21  ;;  %s3211_s12 = sld [smem:[#allocation44_spill]]  ;;  %s2766_s13 = sld [smem:[#allocation4 + $0x1b]] }
 0x11d   : > { %v882_v17 = vmul.f32 %v3203_v37, %v2635_v11  ;;  %v892_v8 = vmul.f32 %v3205_v56, %v2639_v3  ;;  %v964_v33 = vrot.slane %v957_v34, %v2051_v32  ;;  %v1047_v35 = vsel %vm1046_vm6, %v1043_v19, %v1045_v57 }
 0x11e   : > { %v1048_v29 = vsel %vm1046_vm6, %v1045_v57, %v1043_v19  ;;  %v752_v42 = vadd.f32 %v751_v54, %v749_v30  ;;  %v983_v47 = vrot.slane %v976_v55, %v2051_v32  ;;  %v779_v45 = vadd.f32 %v2096_v60, %v721_v46 }
 0x11f   : > { %v1057_v48 = vcombine.low %v1047_v35, %v1048_v29  ;;  %v1052_v62 = vpop.permute.xlu1 %1051  ;;  %v3207_v12 = vstv %s3202_s23  ;;  %v885_v0 = vadd.f32 %v884_v2, %v882_v17  ;;  %v787_v34 = vadd.f32 %v2098_v1, %v729_v27  ;;  %v1050_v28 = vpop.permute.xlu0 %1049  ;;  %s3243_s23 = sld [smem:[#allocation62_spill]] }
 0x120   : > { %v890_v21 = vmul.f32 %v3207_v12, %v2635_v11  ;;  %v3209_v18 = vstv %s3204_s11  ;;  %v900_v16 = vmul.f32 %v3210_v13, %v2639_v3  ;;  %v2690_v54 = vsel %vm400_vm12, %v983_v47, 0.0  ;;  %s1845_s11 = smov 48  }
 0x121   : > { %v898_v38 = vmul.f32 %v3209_v18, %v2635_v11  ;;  %v1064_v60 = vrot.slane %v1057_v48, %v2051_v32  ;;  %v795_v46 = vadd.f32 %v2101_v6, %v737_v63  ;;  %v2694_v31 = vsel %vm400_vm12, %v964_v33, 0.0 }
 0x122   : > { %v893_v57 = vadd.f32 %v892_v8, %v890_v21  ;;  %v1053_v1 = vsel %vm1046_vm6, %v1050_v28, %v1052_v62  ;;  %v1054_v30 = vsel %vm1046_vm6, %v1052_v62, %v1050_v28  ;;  %v753_v61 = vadd.f32 %v752_v42, %v646_v41 }
 0x123   : > { %v1071_v6 = vrot.slane %v1064_v60, %v2051_v32  ;;  %v1076_v2 = vcombine.low %v1053_v1, %v1054_v30  ;;  %v3219_v27 = vstv %s3208_s19  ;;  %v3220_v19 = vstv %s2236_s6  ;;  %s3227_s6 = sld [smem:[#allocation72_spill]]  ;;  %s3257_s19 = sld [smem:[#allocation84_spill]] }
 0x124   : > { %v914_v55 = vmul.f32 %v3219_v27, %v2635_v11  ;;  %v916_v37 = vmul.f32 %v3220_v19, %v2639_v3  ;;  %v886_v41 = vadd.f32 %v885_v0, %v779_v45  ;;  %v3222_v17 = vstv %s3211_s12  ;;  %s1846_s12 = smov 32  }
 0x125   : > { %v991_v7 = vmul.f32 %v3222_v17, %v2690_v54  ;;  %v3223_v56 = vstv %s3212_s27  ;;  %v901_v63 = vadd.f32 %v900_v16, %v898_v38  ;;  %v1083_v33 = vrot.slane %v1076_v2, %v2051_v32  ;;  %s1847_s27 = smov 16  }
 0x126   : > { %v999_v8 = vmul.f32 %v3223_v56, %v2690_v54  ;;  %v3224_v35 = vstv %s3213_s1  ;;  %v894_v42 = vadd.f32 %v893_v57, %v787_v34  ;;  %v3226_v47 = vstv %s2272_s9  ;;  %s3234_s9 = sld [smem:[#allocation69_spill]] }
 0x127   : > { %v989_v29 = vmul.f32 %v3224_v35, %v2694_v31  ;;  %v1007_v48 = vmul.f32 %v3226_v47, %v2690_v54  ;;  %v2730_v62 = vsel %vm2704_vm13, %v1071_v6, 0.0  ;;  %v3228_v45 = vstv %s3214_s2  ;;  %s3273_s2 = sld [smem:[#allocation86_spill]] }
 0x128   : > { %v997_v12 = vmul.f32 %v3228_v45, %v2694_v31  ;;  %v3230_v21 = vstv %s3215_s26  ;;  %v3232_v18 = vstv %s3218_s21  ;;  %v1090_v38 = vrot.slane %v1083_v33, %v2051_v32  ;;  %s3274_s26 = sld [smem:[#allocation23_spill]]  ;;  %s3275_s21 = sld [smem:[#allocation16_spill]] }
 0x129   : > { %v1005_v0 = vmul.f32 %v3230_v21, %v2694_v31  ;;  %v1023_v34 = vmul.f32 %v3232_v18, %v2690_v54  ;;  %v811_v13 = vadd.f32 %v2105_v9, %v753_v61  ;;  %v917_v16 = vadd.f32 %v916_v37, %v914_v55 }
 0x12a   : > { %v3233_v60 = vstv %s3221_s10  ;;  %v992_v57 = vadd.f32 %v991_v7, %v989_v29  ;;  %v1000_v1 = vadd.f32 %v999_v8, %v997_v12  ;;  %v902_v30 = vadd.f32 %v901_v63, %v795_v46  ;;  %s3276_s10 = sld [smem:[#allocation21_spill]] }
 0x12b   : > { %v1021_v28 = vmul.f32 %v3233_v60, %v2694_v31  ;;  %v654_v6 = vadd.f32 %v653_v23, %v2556_v52  ;;  %v2749_v2 = vsel %vm2704_vm13, %v1090_v38, 0.0  ;;  %v3235_v27 = vstv %s3225_s16 }
 0x12c   : > { %v1096_v19 = vmul.f32 %v3235_v27, %v2730_v62  ;;  %v1008_v9 = vadd.f32 %v1007_v48, %v1005_v0  ;;  %v3237_v61 = vstv %s3227_s6  ;;  %v3239_v37 = vstv %s3229_s14 }
 0x12d   : > { %v759_v55 = vmul.f32 %v3237_v61, %v2563_v51  ;;  %v1098_v17 = vmul.f32 %v3239_v37, %v2749_v2  ;;  %v3240_v46 = vstv %s3231_s3  ;;  %v3241_v23 = vstv %s2289_s24  ;;  %s3250_s24 = sld [smem:[#allocation79_spill]] }
 0x12e   : > { %v1104_v52 = vmul.f32 %v3240_v46, %v2730_v62  ;;  %v1106_v36 = vmul.f32 %v3241_v23, %v2749_v2  ;;  %v1024_v7 = vadd.f32 %v1023_v34, %v1021_v28  ;;  %v3242_v56 = vstv %s2308_s17  ;;  %s2789_s17 = sld [smem:[#allocation4 + $0x4c]]  ;;  %s1508_s16 = sshll.u32 %s3274_s26, 1 }
 0x12f   : > { %v1114_v8 = vmul.f32 %v3242_v56, %v2749_v2  ;;  %v918_v63 = vadd.f32 %v917_v16, %v811_v13  ;;  %v1130_v33 = vmul.f32 %v1129_v59, %v2749_v2  ;;  %v3244_v35 = vstv %s3234_s9  ;;  %s1613_s6 = sshll.u32 %s3275_s21, 5  ;;  %s241_s14 = scalar_lea.vmem [#allocation9], %s1508_s16 }
 0x130   : > { %v757_v29 = vmul.f32 %v3244_v35, %v2544_v40  ;;  %v993_v47 = vadd.f32 %v992_v57, %v886_v41  ;;  %v1099_v48 = vadd.f32 %v1098_v17, %v1096_v19  ;;  %v1001_v45 = vadd.f32 %v1000_v1, %v894_v42  ;;  %s1404_s3 = sshll.u32 %s241_s14, 4  ;;  %p3278_p8 = scmp.ne.s32.totalorder %s3276_s10, 0  ;;  %s2902_s3 = int_to_ptr.vmem [resolvable:$true] %s1404_s3 }
 0x131   : > { %v1107_v12 = vadd.f32 %v1106_v36, %v1104_v52  ;;  %v3245_v21 = vstv %s3236_s0  ;;  %v3246_v18 = vstv %s3238_s25  ;;  %v3247_v13 = vstv %s2317_s4  ;;  %s3253_s4 = sld [smem:[#allocation80_spill]]  ;;  %s3277_s25 = sld [smem:[#allocation89_spill]] }
 0x132   : > { %v1112_v0 = vmul.f32 %v3245_v21, %v2730_v62  ;;  %v1128_v34 = vmul.f32 %v3246_v18, %v2730_v62  ;;  %v760_v38 = vadd.f32 %v759_v55, %v757_v29  ;;  %v924_v59 = vmul.f32 %v3247_v13, %v2639_v3 }
 0x133   : > { %v1100_v16 = vadd.f32 %v1099_v48, %v993_v47  ;;  %v1009_v60 = vadd.f32 %v1008_v9, %v902_v30  ;;  %v1025_v41 = vadd.f32 %v1024_v7, %v918_v63  ;;  %v3248_v28 = vstv %s3243_s23  ;;  %s1390_s23 = scalar_lea.sflag [#allocation6], %s3274_s26 }
 0x134   : > { %v922_v42 = vmul.f32 %v3248_v28, %v2635_v11  ;;  %v1108_v57 = vadd.f32 %v1107_v12, %v1001_v45  ;;  %v1115_v1 = vadd.f32 %v1114_v8, %v1112_v0  ;;  %v1131_v27 = vadd.f32 %v1130_v33, %v1128_v34 }
 0x135   : > { %v660_v19 = vmul.f32 %v659_v20, %v2480_v10  ;;  %v1157_v61 = vrot.slane %v1100_v16, %v2068_v44  ;;  %v1153_v55 = vrot.slane %v1100_v16, %v2066_v43  ;;  %v3251_v30 = vstv %s2327_s29  ;;  %s3261_s29 = sld [smem:[#allocation81_spill]] }
 0x136   : > { %v1029_v9 = vmul.f32 %v3251_v30, %v2694_v31  ;;  %v3252_v37 = vstv %s2311_s18  ;;  %v761_v46 = vadd.f32 %v760_v38, %v654_v6  ;;  %v925_v52 = vadd.f32 %v924_v59, %v922_v42  ;;  %s3259_s18 = sld [smem:[#allocation61_spill]] }
 0x137   : > { %v658_v17 = vmul.f32 %v3252_v37, %v2460_v4  ;;  %v3254_v23 = vstv %s2337_s8  ;;  %v555_v20 = vadd.f32 %v2574_v50, %v2569_v49  ;;  %1162 = vrot.lane.b32.xlu1 %v1157_v61, %s1845_s11  ;;  %1160 = vrot.lane.b32.xlu0 %v1153_v55, %s1845_s11  ;;  %v3258_v7 = vstv %s3249_s20  ;;  %s3264_s8 = sld [smem:[#allocation83_spill]]  ;;  %s1851_s20 = smov [#allocation9]  }
 0x138   : > { %v1031_v36 = vmul.f32 %v3254_v23, %v2690_v54  ;;  %v765_v56 = vmul.f32 %v3258_v7, %v2544_v40  ;;  %v3260_v4 = vstv %s3250_s24  ;;  %v1119_v8 = vstv %s2766_s13  ;;  %s2900_s13 = scalar_lea.hbm %s3277_s25, %s1613_s6  ;;  %s1752_s24 = sshll.u32 %s1851_s20, 4  ;;  %s1753_s24 = int_to_ptr.vmem [resolvable:$false] %s1752_s24 }
 0x139   : > { %v661_v10 = vadd.f32 %v660_v19, %v658_v17  ;;  %v767_v6 = vmul.f32 %v3260_v4, %v2563_v51  ;;  %v1194_v63 = vrot.slane %v1108_v57, %v2068_v44  ;;  %v1116_v33 = vadd.f32 %v1115_v1, %v1009_v60  ;;  %p1755_p0 = scmp.lt.s32.totalorder %s2902_s3, %s1753_s24 }
 0x13a   : > { %v1132_v35 = vadd.f32 %v1131_v27, %v1025_v41  ;;  %v3262_v49 = vstv %s3253_s4  ;;  %v1190_v29 = vrot.slane %v1108_v57, %v2066_v43  ;;  %v3263_v45 = vstv %s3255_s7  ;;  %s1754_s4 = scalar_lea.vmem %s1753_s24, 64 }
 0x13b   : > { %v1138_v50 = vmul.f32 %v3262_v49, %v2749_v2  ;;  %v662_v47 = vadd.f32 %v661_v10, %v555_v20  ;;  %v768_v48 = vadd.f32 %v767_v6, %v765_v56  ;;  %v932_v40 = vmul.f32 %v3263_v45, %v2639_v3  ;;  %1199 = vrot.lane.b32.xlu1 %v1194_v63, %s1846_s12 }
 0x13c   : > { %v819_v51 = vadd.f32 %v2113_v15, %v761_v46  ;;  %v1032_v12 = vadd.f32 %v1031_v36, %v1029_v9  ;;  %v3265_v21 = vstv %s3256_s22  ;;  %v3266_v18 = vstv %s3257_s19  ;;  %1197 = vrot.lane.b32.xlu0 %v1190_v29, %s1846_s12 }
 0x13d   : > { %v1136_v0 = vmul.f32 %v3265_v21, %v2730_v62  ;;  %v1039_v34 = vmul.f32 %v3266_v18, %v2690_v54  ;;  %v3267_v38 = vstv %s3259_s18  ;;  %v769_v59 = vadd.f32 %v768_v48, %v662_v47 }
 0x13e   : > { %v908_v13 = vmul.f32 %v3267_v38, %v2639_v3  ;;  %v3268_v16 = vstv %s3261_s29  ;;  %v1121_v15 = vstv %s2789_s17  ;;  %v1232_v41 = vrot.slane %v1116_v33, %v2068_v44  ;;  %s1748_s17 = scalar_lea.vmem %s2902_s3, 32 }
 0x13f   : > { %v930_v60 = vmul.f32 %v3268_v16, %v2635_v11  ;;  %v926_v28 = vadd.f32 %v925_v52, %v819_v51  ;;  %v1139_v42 = vadd.f32 %v1138_v50, %v1136_v0  ;;  %v3269_v57 = vstv %s3264_s8  ;;  %v376_v50 = vld [vmem:[%s3273_s2] sm:$0x3]  ;;  %p1749_p4 = scmp.ne.s32.totalorder %s2902_s3, %s1748_s17  ;;  %p1756_p3 = scmp.lt.s32.totalorder %s1754_s4, %s1748_s17 }
 0x140   : > { %v1037_v1 = vmul.f32 %v3269_v57, %v2694_v31  ;;  %v1228_v3 = vrot.slane %v1116_v33, %v2066_v43  ;;  %v1272_v27 = vrot.slane %v1132_v35, %v2068_v44  ;;  %v3270_v61 = vstv %s2388_s28  ;;  %1237 = vrot.lane.b32.xlu1 %v1232_v41, %s1847_s27  ;;  %s1848_s28 = smov 112  }
 0x141   : > { %v933_v19 = vadd.f32 %v932_v40, %v930_v60  ;;  %v1146_v55 = vmul.f32 %v3270_v61, %v2749_v2  ;;  %v1268_v11 = vrot.slane %v1132_v35, %v2066_v43  ;;  %v1033_v30 = vadd.f32 %v1032_v12, %v926_v28  ;;  %p1750_p2 = pnand %p1749_p4, %p3278_p8  ;;  %p1757_p5 = por %p1756_p3, %p1755_p0 }
 0x142   : > { %v1040_v9 = vadd.f32 %v1039_v34, %v1037_v1  ;;  %v3271_v37 = vstv %s2382_s5  ;;  %1235 = vrot.lane.b32.xlu0 %v1228_v3, %s1847_s27  ;;  %v827_v46 = vadd.f32 %v2115_v22, %v769_v59  ;;  %v638_v52 = vadd.f32 %v2508_v14, %v2433_v5 }
 0x143   : > { %v1144_v17 = vmul.f32 %v3271_v37, %v2730_v62  ;;  %v909_v23 = vadd.f32 %v908_v13, %v2656_v53  ;;  %v3272_v36 = vstv %s2390_s30  ;;  %v1015_v10 = vmul.f32 %v1014_v24, %v2690_v54  ;;  %s1850_s30 = smov 80   ;;  %p1751_p12 = pneg %p1750_p2 }
 0x144   : > { %v1013_v20 = vmul.f32 %v3272_v36, %v2694_v31  ;;  %v1120_v7 = vmul.f32 %v1119_v8, %v2730_v62  ;;  %v1122_v56 = vmul.f32 %v1121_v15, %v2749_v2  ;;  %v1140_v4 = vadd.f32 %v1139_v42, %v1033_v30  ;;  %1277 = vrot.lane.b32.xlu1 %v1272_v27, %s1848_s28 }
 0x145   : > { %v934_v6 = vadd.f32 %v933_v19, %v827_v46  ;;  %v1147_v63 = vadd.f32 %v1146_v55, %v1144_v17  ;;  %v745_v22 = vadd.f32 %v2593_v58, %v638_v52  ;;  %v409_v45 = vadd.s32 4294967294, %v376_v50  ;;  %p1758_p11 = pnand %p1757_p5, %p1751_p12 }
 0x146   : > { %v1016_v33 = vadd.f32 %v1015_v10, %v1013_v20  ;;  %v1123_v35 = vadd.f32 %v1122_v56, %v1120_v7  ;;  %1275 = vrot.lane.b32.xlu0 %v1268_v11, %s1848_s28  ;;  %v1310_v53 = vrot.slane %v1140_v4, %v2068_v44  ;;  %v1306_v24 = vrot.slane %v1140_v4, %v2066_v43 }
 0x147   : > { %v1041_v5 = vadd.f32 %v1040_v9, %v934_v6  ;;  %v803_v14 = vadd.f32 %v2117_v25, %v745_v22  ;;  %vm1201_vm15 = vcmp.lt.s32.totalorder %v2198_v26, 32  ;;  %v413_v21 = vadd.s32 4294967295, %v376_v50 }
 0x148   : > { %1315 = vrot.lane.b32.xlu1 %v1310_v53, %s1849_s15  ;;  %vm1239_vm0 = vcmp.lt.s32.totalorder %v2198_v26, 16  ;;  %vm410_vm2 = vcmp.ge.s32.totalorder %v409_v45, 0  ;;  %vm411_vm3 = vcmp.lt.s32.totalorder %v409_v45, 16  ;;  %vm1279_vm9 = vcmp.lt.s32.totalorder %v2198_v26, 112 }
 0x149   : > { %v1148_v54 = vadd.f32 %v1147_v63, %v1041_v5  ;;  %v910_v31 = vadd.f32 %v909_v23, %v803_v14  ;;  %vm412_vm6 = vmand %vm410_vm2, %vm411_vm3  ;;  %vm414_vm7 = vcmp.ge.s32.totalorder %v413_v21, 0  ;;  %vm415_vm8 = vcmp.lt.s32.totalorder %v413_v21, 16 }
 0x14a   : > { %1313 = vrot.lane.b32.xlu0 %v1306_v24, %s1849_s15  ;;  %v420_v28 = vadd.s32 1, %v376_v50  ;;  %vm417_vm11 = vcmp.ge.s32.totalorder %v376_v50, 0  ;;  %vm416_vm12 = vmand %vm414_vm7, %vm415_vm8  ;;  %vm418_vm13 = vcmp.lt.s32.totalorder %v376_v50, 16  ;;  %v424_v61 = vadd.s32 2, %v376_v50 }
 0x14b   : > { %v1017_v62 = vadd.f32 %v1016_v33, %v910_v31  ;;  %v1348_v58 = vrot.slane %v1148_v54, %v2068_v44  ;;  %v1344_v2 = vrot.slane %v1148_v54, %v2066_v43  ;;  %v405_v43 = vadd.s32 4294967293, %v376_v50  ;;  %vm419_vm2 = vmand %vm417_vm11, %vm418_vm13 }
 0x14c   : > { %v428_v23 = vadd.s32 3, %v376_v50  ;;  %vm425_vm3 = vcmp.ge.s32.totalorder %v424_v61, 0 }
 0x14d   : > { %v2867_v8 = vadd.f32 %v1123_v35, %v1017_v62  ;;  %1353 = vrot.lane.b32.xlu1 %v1348_v58, %s1850_s30  ;;  %vm406_vm4 = vcmp.ge.s32.totalorder %v405_v43, 0  ;;  %vm407_vm5 = vcmp.lt.s32.totalorder %v405_v43, 16 }
 0x14e   : > { %1351 = vrot.lane.b32.xlu0 %v1344_v2, %s1850_s30  ;;  %vm408_vm10 = vmand %vm406_vm4, %vm407_vm5  ;;  %vm426_vm4 = vcmp.lt.s32.totalorder %v424_v61, 16  ;;  %vm1355_vm5 = vcmp.lt.s32.totalorder %v2198_v26, 80  ;;  %vm429_vm8 = vcmp.ge.s32.totalorder %v428_v23, 0 }
 0x14f   : > { %v1262_v4 = vsel %vm419_vm2, %v2867_v8, 0.0  ;;  %vm427_vm7 = vmand %vm425_vm3, %vm426_vm4 }
 0x1a9   : > { %v1163_v25 = vpop.permute.xlu1 %1162  ;;  %v1161_v49 = vpop.permute.xlu0 %1160 }
 0x1aa   : > { %v1165_v29 = vsel %vm1164_vm14, %v1161_v49, %v1163_v25  ;;  %v1166_v47 = vsel %vm1164_vm14, %v1163_v25, %v1161_v49  ;;  %vm1317_vm14 = vcmp.lt.s32.totalorder %v2198_v26, 96 }
 0x1ab   : > { %v1169_v48 = vcombine.low %v1166_v47, %v1165_v29 }
 0x1ad   : > { %v1200_v44 = vpop.permute.xlu1 %1199  ;;  %v1176_v0 = vrot.slane %v1169_v48, %v2051_v32 }
 0x1ae   : > { %v1198_v40 = vpop.permute.xlu0 %1197 }
 0x1af   : > { %v1202_v51 = vsel %vm1201_vm15, %v1198_v40, %v1200_v44  ;;  %v1203_v12 = vsel %vm1201_vm15, %v1200_v44, %v1198_v40  ;;  %v1183_v60 = vrot.slane %v1176_v0, %v2051_v32  ;;  %vm421_vm15 = vcmp.ge.s32.totalorder %v420_v28, 0 }
 0x1b0   : > { %v1206_v18 = vcombine.low %v1203_v12, %v1202_v51 }
 0x1b1   : > { %v1185_v55 = vsel %vm408_vm10, %v1183_v60, 0.0 }
 0x1b2   : > { %v1213_v34 = vrot.slane %v1206_v18, %v2051_v32  ;;  %v1238_v38 = vpop.permute.xlu1 %1237 }
 0x1b4   : > { %v1236_v13 = vpop.permute.xlu0 %1235  ;;  %v1220_v15 = vrot.slane %v1213_v34, %v2051_v32 }
 0x1b5   : > { %v1240_v59 = vsel %vm1239_vm0, %v1236_v13, %v1238_v38  ;;  %v1241_v16 = vsel %vm1239_vm0, %v1238_v38, %v1236_v13  ;;  %vm422_vm0 = vcmp.lt.s32.totalorder %v420_v28, 16 }
 0x1b6   : > { %v1244_v41 = vcombine.low %v1241_v16, %v1240_v59  ;;  %v1222_v42 = vsel %vm412_vm6, %v1220_v15, 0.0  ;;  %v1278_v1 = vpop.permute.xlu1 %1277  ;;  %vm423_vm6 = vmand %vm421_vm15, %vm422_vm0 }
 0x1b7   : > { %v1223_v9 = vadd.f32 %v1222_v42, %v1185_v55 }
 0x1b8   : > { %v1251_v57 = vrot.slane %v1244_v41, %v2051_v32  ;;  %v1276_v3 = vpop.permute.xlu0 %1275 }
 0x1b9   : > { %v1280_v27 = vsel %vm1279_vm9, %v1276_v3, %v1278_v1  ;;  %v1281_v19 = vsel %vm1279_vm9, %v1278_v1, %v1276_v3  ;;  %vm430_vm9 = vcmp.lt.s32.totalorder %v428_v23, 16 }
 0x1ba   : > { %v1258_v11 = vrot.slane %v1251_v57, %v2051_v32  ;;  %v1284_v30 = vcombine.low %v1280_v27, %v1281_v19  ;;  %v1316_v46 = vpop.permute.xlu1 %1315  ;;  %vm431_vm10 = vmand %vm429_vm8, %vm430_vm9 }
 0x1bc   : > { %v1260_v37 = vsel %vm416_vm12, %v1258_v11, 0.0  ;;  %v1291_v17 = vrot.slane %v1284_v30, %v2051_v32  ;;  %v1314_v52 = vpop.permute.xlu0 %1313 }
 0x1bd   : > { %v1261_v36 = vadd.f32 %v1260_v37, %v1223_v9  ;;  %v1318_v20 = vsel %vm1317_vm14, %v1314_v52, %v1316_v46  ;;  %v1319_v10 = vsel %vm1317_vm14, %v1316_v46, %v1314_v52 }
 0x1be   : > { %v1298_v7 = vrot.slane %v1291_v17, %v2051_v32  ;;  %v1322_v56 = vcombine.low %v1318_v20, %v1319_v10 }
 0x1bf   : > { %v1354_v63 = vpop.permute.xlu1 %1353  ;;  %v1263_v33 = vadd.f32 %v1262_v4, %v1261_v36 }
 0x1c0   : > { %v1329_v6 = vrot.slane %v1322_v56, %v2051_v32  ;;  %v1352_v22 = vpop.permute.xlu0 %1351  ;;  %v1300_v14 = vsel %vm423_vm6, %v1298_v7, 0.0 }
 0x1c1   : > { %v1356_v35 = vsel %vm1355_vm5, %v1352_v22, %v1354_v63  ;;  %v1357_v5 = vsel %vm1355_vm5, %v1354_v63, %v1352_v22  ;;  %v1301_v31 = vadd.f32 %v1300_v14, %v1263_v33 }
 0x1c2   : > { %v1336_v53 = vrot.slane %v1329_v6, %v2051_v32  ;;  %v1360_v26 = vcombine.low %v1356_v35, %v1357_v5 }
 0x1c4   : > { %v1338_v24 = vsel %vm427_vm7, %v1336_v53, 0.0  ;;  %v1367_v54 = vrot.slane %v1360_v26, %v2051_v32 }
 0x1c5   : > { %v1339_v58 = vadd.f32 %v1338_v24, %v1301_v31 }
 0x1c6   : > { %v1374_v62 = vrot.slane %v1367_v54, %v2051_v32 }
 0x1c8   : > { %v1376_v2 = vsel %vm431_vm10, %v1374_v62, 0.0 }
 0x1c9   : > { %v1377_v8 = vadd.f32 %v1376_v2, %v1339_v58 }
 0x1cb   : > { %v1606_v25 = vmul.f32 -1.442695, %v1377_v8 }
 0x1cd   : > { %1701 = vpow2.f32 %v1606_v25 }
 0x1d7   : > { %v1702_v49 = vpop.eup %1701 }
 0x1d8   : > { %v1381_v50 = vadd.f32 1.0, %v1702_v49 }
 0x1da   : > { %1703 = vrcp.f32 %v1381_v50 }
 0x1e4   : > { %v1704_v32 = vpop.eup %1703 }
 0x1e5   : > { %1388 = vst.msk [vmem:[%s241_s14] sm:$0x3] %vm2055_vm1, %v1704_v32 }
 0x1e6   : > { %1761 = shalt.err (!%p1758_p11)
}
 0x1e7   : > { %s1762_s7 = scalar_lea.hbm %s2900_s13, 32  ;;  %s1766_s19 = scalar_lea.hbm %s3277_s25, 64 }
 0x1e8   : > { %p1763_p13 = scmp.ne.s32.totalorder %s2900_s13, %s1762_s7  ;;  %p1767_p6 = scmp.lt.u32.totalorder %s2900_s13, %s3277_s25 }
 0x1e9   : > { %p1768_p9 = scmp.lt.u32.totalorder %s1766_s19, %s1762_s7  ;;  %p1770_p4 = scmp.lt.u32.totalorder %s1762_s7, %s2900_s13 }
 0x1ea   : > { %p1764_p7 = pnand %p1763_p13, %p3278_p8 }
 0x1eb   : > { %p1769_p1 = por %p1768_p9, %p1767_p6 }
 0x1ec   : > { %p1765_p10 = pneg %p1764_p7 }
 0x1ed   : > { %p1771_p2 = por %p1770_p4, %p1769_p1 }
 0x1ef   : > { %p1772_p12 = pnand %p1771_p2, %p1765_p10 }
 0x1f1   : > { %1775 = shalt.err (!%p1772_p12)
}
 0x1f2   : > { %1620 = dma.vmem_to_hbm [thread:$0]  (%p3278_p8), %s2902_s3, 32, %s2900_s13, %s1390_s23  }
 0x1f3 PF: > { %s3279_s8 = sld [smem:[#allocation13_spill]]  ;;  %s3280_s12 = sld [smem:[#allocation19_spill]] }
 0x1f4   : > { %s3281_s27 = sld [smem:[#allocation18_spill]] }
 0x1f9   : > { %s1416_s28 = sand.u32 1, %s3279_s8   ;;  %p3282_p0 = scmp.ne.s32.totalorder %s3280_s12, 0 }
 0x1fa   : > { %p3283_p3 = scmp.ge.s32.totalorder %s3281_s27, 2  ;;  %s1417_s15 = scalar_lea.sflag [#allocation6], %s1416_s28 }
 0x1fc   : > { %p1631_p5 = pnand %p3283_p3, %p3282_p0 }
 0x1fe   : > { %1809 = dma.done.wait (!%p1631_p5), %s1417_s15, 32  }
 0x1ff   : > { %1811 = vsyncadd (!%p1631_p5), %s1417_s15, 4294967264  ;;  %s21_s20 = sadd.s32 1, %s3281_s27   ;;  %s3284_s15 = sld [smem:[#allocation14_spill]] }
 0x200   : > { %p18_p11 = scmp.ge.s32.totalorder %s21_s20, 4   ;;  %s3285_s16 = sld [smem:[#allocation15_spill]] }
 0x201   : > { %s3286_s17 = sld [smem:[#allocation22_spill]]  ;;  %s3287_s18 = sld [smem:[#allocation17_spill]] }
 0x202   : > { %s3288_s19 = sld [smem:[#allocation20_spill]]  ;;  %20 = sbr.rel (!%p18_p11) target bundleno = 13 (0xd), region = 98 }
 0x209   :  { %1422 = vsyncpa [#allocation5], 1 }
 0x20a   :  { %1424 = vsyncpa [#allocation5 + $0x1], 1 }
 0x20b   :  { %1425 = vsyncpa [#allocation6], 1 }
 0x20c   :  { %1427 = vsyncpa [#allocation6 + $0x1], 1 }
 0x20d   :  { %1428 = vsyncpa [#allocation7], 1 }
 0x20e   :  { %1430 = vsyncpa [#allocation7 + $0x1], 1 }

</bundles_post_ra>
